<compile_context>
chip_gen: v7x
topology: tpu7x:2x2x1
jax: 0.10.0
libtpu: 0.0.40
codegen_flags: <defaults>
</compile_context>

<pallas_src>
import jax
import jax.numpy as jnp
import numpy as np
from jax import lax
from jax.experimental import pallas as pl
from jax.experimental.pallas import tpu as pltpu


# ---------------------------------------------------------------------------
# Fused Pallas kernel (AttentionGate + implicit concat + ConvBlock)
# ---------------------------------------------------------------------------
def _make_dense_kernel(num_plain):
    """Build the fused kernel for `num_plain` = layer-1 un-gated encoder maps.

    Kernel argument order (all per-image, lane-dense (H, W*C) slabs unless 2-D):
      eL_ref   : (1, H, W*Ce) f32   deepest encoder feature (gated)
      d_ref    : (1, H, W*Cd) bf16  upsampled decoder feature
      plain[i] : (1, H, W*Ce) bf16  e_1 .. e_{L-1}
      me_ref   : (W*Ce, W*Ca) bf16  block-diag 1x1 W_e conv (BN scale folded)
      md_ref   : (W*Cd, W*Ca) bf16  block-diag 1x1 W_d conv (BN scale folded)
      mpsi_ref : (W*Ca, W*Ca) bf16  block-diag 1x1 output conv
      sh_att   : (1, W*Ca)    f32   folded BN shifts + biases of both branches
      bpsi_ref : (1, W*Ca)    f32   output conv bias
      m1e_ref  : (L, 3, W*Ce, W*Cout) bf16  banded conv1 weights, per e piece
      m1d_ref  : (3, W*Cd, W*Cout)    bf16  banded conv1 weights, d piece
      sh1_ref  : (1, W*Cout)  f32   folded BN1 shift
      m2_ref   : (3, W*Cout, W*Cout)  bf16  banded conv2 weights
      sh2_ref  : (1, W*Cout)  f32   folded BN2 shift
      o_ref    : (1, H, W*Cout) f32
    """

    def kernel(eL_ref, d_ref, *rest):
        plain_refs = rest[:num_plain]
        (me_ref, md_ref, mpsi_ref, sh_att_ref, bpsi_ref,
         m1e_ref, m1d_ref, sh1_ref, m2_ref, sh2_ref, o_ref) = rest[num_plain:]

        f32 = jnp.float32
        bf16 = jnp.bfloat16
        eL = eL_ref[0]                       # (H, W*Ce) f32
        d = d_ref[0]                         # (H, W*Cd) bf16

        # ---- AttentionGate: 1x1 convs as block-diag matmuls, BN folded ----
        g = jnp.dot(eL.astype(bf16), me_ref[...], preferred_element_type=f32)
        g = g + jnp.dot(d, md_ref[...], preferred_element_type=f32)
        hgt = jnp.maximum(g + sh_att_ref[...], 0.0)
        p = jnp.dot(hgt.astype(bf16), mpsi_ref[...],
                    preferred_element_type=f32) + bpsi_ref[...]
        psi = 1.0 / (1.0 + jnp.exp(-p))
        gated = psi * eL                     # (H, W*Ce) f32, stays in vregs

        # ---- banded 3x3 conv on a lane-dense slab ----
        def conv3x3(x_bf16, tap):
            z0 = jnp.dot(x_bf16, tap(0), preferred_element_type=f32)  # x[h-1]
            z1 = jnp.dot(x_bf16, tap(1), preferred_element_type=f32)  # x[h]
            z2 = jnp.dot(x_bf16, tap(2), preferred_element_type=f32)  # x[h+1]
            zero = jnp.zeros((1, z1.shape[1]), f32)
            up = jnp.concatenate([zero, z0[:-1, :]], axis=0)
            dn = jnp.concatenate([z2[1:, :], zero], axis=0)
            return z1 + up + dn

        # ---- conv1: f = [e_1..e_{L-1}, gated, d] is never materialized;
        #      the banded weights are split per piece and matmuls accumulated.
        acc = conv3x3(d, lambda t: m1d_ref[t])
        for idx in range(num_plain):
            x_plain = plain_refs[idx][0]
            acc = acc + conv3x3(x_plain,
                                lambda t, idx=idx: m1e_ref[idx, t])
        acc = acc + conv3x3(gated.astype(bf16),
                            lambda t: m1e_ref[num_plain, t])
        y1 = jnp.maximum(acc + sh1_ref[...], 0.0)

        # ---- conv2 ----
        y2 = conv3x3(y1.astype(bf16), lambda t: m2_ref[t])
        o_ref[0] = jnp.maximum(y2 + sh2_ref[...], 0.0).astype(o_ref.dtype)

    return kernel


# ---------------------------------------------------------------------------
# Wrapper-side weight preparation (folding / lane-dense layouts)
# ---------------------------------------------------------------------------
def _fold_bn(gamma, beta, mean, var, eps=1e-5):
    scale = gamma / jnp.sqrt(var + eps)
    return scale, beta - mean * scale


def _tile_lane(v, width):
    """(C,) per-channel vector -> (1, W*C) lane vector (w-major, c-minor)."""
    return jnp.tile(v, width).reshape(1, width * v.shape[0])


def _block_diag_1x1(w_io, width):
    """(Cin, Cout) 1x1-conv weight -> block-diagonal (W*Cin, W*Cout)."""
    cin, cout = w_io.shape
    eye = jnp.eye(width, dtype=w_io.dtype)
    return jnp.einsum("pq,io->piqo", eye, w_io).reshape(width * cin, width * cout)


def _banded_3x3(w_hwio, width):
    """(3,3,Cin,Cout) conv weight -> banded matrices (3, W*Cin, W*Cout).

    M[dh, wp*Cin+ci, w*Cout+co] = w[dh, wp-w+1, ci, co] inside the band, else 0,
    i.e. the width taps and the width zero-padding of a pad=1 conv live in the
    matrix; one output row then needs one matmul per height tap.
    """
    cin, cout = w_hwio.shape[2], w_hwio.shape[3]
    sel = np.zeros((3, width, width), np.float32)
    for dw in range(3):
        for w in range(width):
            wp = w + dw - 1
            if 0 <= wp < width:
                sel[dw, wp, w] = 1.0
    m = jnp.einsum("apw,daio->dpiwo", jnp.asarray(sel, w_hwio.dtype), w_hwio)
    return m.reshape(3, width * cin, width * cout)


def _interp_matrix(n_out, n_in):
    """1-D linear interpolation matrix, PyTorch align_corners=True."""
    m = np.zeros((n_out, n_in), np.float32)
    if n_in == 1:
        m[:, 0] = 1.0
        return m
    for i in range(n_out):
        src = i * (n_in - 1) / (n_out - 1)
        lo = min(int(np.floor(src)), n_in - 2)
        frac = src - lo
        m[i, lo] += 1.0 - frac
        m[i, lo + 1] += frac
    return m


def upsample2x_bilinear_align_corners(x_nhwc):
    """nn.Upsample(scale_factor=2, mode='bilinear', align_corners=True)."""
    n, h, w, c = x_nhwc.shape
    a = jnp.asarray(_interp_matrix(2 * h, h))
    b = jnp.asarray(_interp_matrix(2 * w, w))
    hp = lax.Precision.HIGHEST
    t = jnp.einsum("ih,nhwc->niwc", a, x_nhwc, precision=hp)
    return jnp.einsum("jw,niwc->nijc", b, t, precision=hp)


# ---------------------------------------------------------------------------
# Dense.forward: NCHW in, NCHW out.  layer = len(e_nchw_list)
# ---------------------------------------------------------------------------
def dense_forward(d_nchw, e_nchw_list, params):
    to_nhwc = lambda t: jnp.transpose(t, (0, 2, 3, 1))
    d_up = upsample2x_bilinear_align_corners(to_nhwc(d_nchw))   # f32, exact
    es = [to_nhwc(e) for e in e_nchw_list]

    layer = len(es)
    n, h, w, ce = es[-1].shape
    cd = d_up.shape[-1]
    pa, pc = params["att"], params["conv"]
    ca = pa["we"].shape[-1]
    cout = pc["w1"].shape[-1]
    bf16, f32 = jnp.bfloat16, jnp.float32

    # --- AttentionGate weights (BN folded, block-diagonal lane layout) ---
    s_e, sh_e = _fold_bn(pa["bn_e_gamma"], pa["bn_e_beta"],
                         pa["bn_e_mean"], pa["bn_e_var"])
    s_d, sh_d = _fold_bn(pa["bn_d_gamma"], pa["bn_d_beta"],
                         pa["bn_d_mean"], pa["bn_d_var"])
    me = _block_diag_1x1(pa["we"] * s_e[None, :], w).astype(bf16)
    md = _block_diag_1x1(pa["wd"] * s_d[None, :], w).astype(bf16)
    mpsi = _block_diag_1x1(pa["wpsi"], w).astype(bf16)
    sh_att = _tile_lane(pa["be"] * s_e + sh_e + pa["bd"] * s_d + sh_d,
                        w).astype(f32)
    bpsi = _tile_lane(pa["bpsi"], w).astype(f32)

    # --- ConvBlock weights: BN folded, banded, split per concat piece ---
    s1, b1 = _fold_bn(pc["bn1_gamma"], pc["bn1_beta"],
                      pc["bn1_mean"], pc["bn1_var"])
    s2, b2 = _fold_bn(pc["bn2_gamma"], pc["bn2_beta"],
                      pc["bn2_mean"], pc["bn2_var"])
    w1s = pc["w1"] * s1[None, None, None, :]            # (3,3,Cin,Cout)
    m1e = jnp.stack(
        [_banded_3x3(w1s[:, :, i * ce:(i + 1) * ce, :], w) for i in range(layer)],
        axis=0).astype(bf16)                             # (L,3,W*Ce,W*Cout)
    m1d = _banded_3x3(w1s[:, :, layer * ce:, :], w).astype(bf16)
    sh1 = _tile_lane(b1, w).astype(f32)
    m2 = _banded_3x3(pc["w2"] * s2[None, None, None, :], w).astype(bf16)
    sh2 = _tile_lane(b2, w).astype(f32)

    # --- lane-dense per-image slabs ---
    eL2d = es[-1].reshape(n, h, w * ce).astype(f32)
    d2d = d_up.reshape(n, h, w * cd).astype(bf16)
    plain2d = [es[i].reshape(n, h, w * ce).astype(bf16) for i in range(layer - 1)]

    kernel = _make_dense_kernel(layer - 1)

    in_specs = [
        pl.BlockSpec((1, h, w * ce), lambda i: (i, 0, 0)),     # e_L
        pl.BlockSpec((1, h, w * cd), lambda i: (i, 0, 0)),     # d (upsampled)
    ]
    in_specs += [pl.BlockSpec((1, h, w * ce), lambda i: (i, 0, 0))
                 for _ in plain2d]                             # e_1..e_{L-1}
    in_specs += [
        pl.BlockSpec((w * ce, w * ca), lambda i: (0, 0)),      # me
        pl.BlockSpec((w * cd, w * ca), lambda i: (0, 0)),      # md
        pl.BlockSpec((w * ca, w * ca), lambda i: (0, 0)),      # mpsi
        pl.BlockSpec((1, w * ca), lambda i: (0, 0)),           # sh_att
        pl.BlockSpec((1, w * ca), lambda i: (0, 0)),           # bpsi
        pl.BlockSpec((layer, 3, w * ce, w * cout),
                     lambda i: (0, 0, 0, 0)),                  # m1e
        pl.BlockSpec((3, w * cd, w * cout), lambda i: (0, 0, 0)),  # m1d
        pl.BlockSpec((1, w * cout), lambda i: (0, 0)),         # sh1
        pl.BlockSpec((3, w * cout, w * cout), lambda i: (0, 0, 0)),  # m2
        pl.BlockSpec((1, w * cout), lambda i: (0, 0)),         # sh2
    ]

    out = pl.pallas_call(
        kernel,
        out_shape=jax.ShapeDtypeStruct((n, h, w * cout), jnp.float32),
        grid=(n,),
        in_specs=in_specs,
        out_specs=pl.BlockSpec((1, h, w * cout), lambda i: (i, 0, 0)),
        compiler_params=pltpu.CompilerParams(
            dimension_semantics=("parallel",)),
    )(eL2d, d2d, *plain2d, me, md, mpsi, sh_att, bpsi, m1e, m1d, sh1, m2, sh2)

    return jnp.transpose(out.reshape(n, h, w, cout), (0, 3, 1, 2))


# ---------------------------------------------------------------------------
# Pure-JAX reference (for correctness check)
# ---------------------------------------------------------------------------
def _reference_forward(d_nchw, e_nchw_list, params):
    hp = lax.Precision.HIGHEST
    to_nhwc = lambda t: jnp.transpose(t, (0, 2, 3, 1))

    def bn(x, g, b, m, v, eps=1e-5):
        return (x - m) / jnp.sqrt(v + eps) * g + b

    d = upsample2x_bilinear_align_corners(to_nhwc(d_nchw))
    es = [to_nhwc(e) for e in e_nchw_list]

    pa = params["att"]
    ge = bn(jnp.einsum("nhwc,co->nhwo", es[-1], pa["we"], precision=hp) + pa["be"],
            pa["bn_e_gamma"], pa["bn_e_beta"], pa["bn_e_mean"], pa["bn_e_var"])
    gd = bn(jnp.einsum("nhwc,co->nhwo", d, pa["wd"], precision=hp) + pa["bd"],
            pa["bn_d_gamma"], pa["bn_d_beta"], pa["bn_d_mean"], pa["bn_d_var"])
    hgt = jnp.maximum(ge + gd, 0.0)
    psi = jax.nn.sigmoid(
        jnp.einsum("nhwc,co->nhwo", hgt, pa["wpsi"], precision=hp) + pa["bpsi"])
    gated = psi * es[-1]

    f = jnp.concatenate(es[:-1] + [gated, d], axis=-1)

    pc = params["conv"]

    def conv3(x, w):
        return lax.conv_general_dilated(
            x, w, window_strides=(1, 1), padding=((1, 1), (1, 1)),
            dimension_numbers=("NHWC", "HWIO", "NHWC"), precision=hp)

    y = jnp.maximum(bn(conv3(f, pc["w1"]), pc["bn1_gamma"], pc["bn1_beta"],
                       pc["bn1_mean"], pc["bn1_var"]), 0.0)
    y = jnp.maximum(bn(conv3(y, pc["w2"]), pc["bn2_gamma"], pc["bn2_beta"],
                       pc["bn2_mean"], pc["bn2_var"]), 0.0)
    return jnp.transpose(y, (0, 3, 1, 2))


# ---------------------------------------------------------------------------
# Parameter init (deterministic synthetic weights, inference-mode BN stats)
# ---------------------------------------------------------------------------
def init_params(key, enc_ch, dec_ch, out_ch, layer):
    keys = iter(jax.random.split(key, 40))
    f32 = jnp.float32

    def nrm(shape, scale):
        return scale * jax.random.normal(next(keys), shape, f32)

    def bn_params(prefix):
        return {
            prefix + "_gamma": 1.0 + nrm((out_ch,), 0.1),
            prefix + "_beta": nrm((out_ch,), 0.1),
            prefix + "_mean": nrm((out_ch,), 0.05),
            prefix + "_var": 0.5 + jax.random.uniform(next(keys), (out_ch,), f32),
        }

    att = {
        "we": nrm((enc_ch, out_ch), 0.3), "be": nrm((out_ch,), 0.1),
        "wd": nrm((dec_ch, out_ch), 0.3), "bd": nrm((out_ch,), 0.1),
        "wpsi": nrm((out_ch, out_ch), 0.3), "bpsi": nrm((out_ch,), 0.1),
    }
    att.update(bn_params("bn_e"))
    att.update(bn_params("bn_d"))

    cin = enc_ch * layer + dec_ch
    conv = {
        "w1": nrm((3, 3, cin, out_ch), 0.1),
        "w2": nrm((3, 3, out_ch, out_ch), 0.1),
    }
    conv.update(bn_params("bn1"))
    conv.update(bn_params("bn2"))
    return {"att": att, "conv": conv}


if __name__ == "__main__":
    key = jax.random.PRNGKey(0)
    k_d, k_e1, k_e2, k_p = jax.random.split(key, 4)

    LAYER = 2
    N, ENC_C, DEC_C, OUT_C = 2, 8, 16, 8     # Dense([8, 16], 8, layer=2)
    H_E = W_E = 16                           # encoder spatial size
    H_D = W_D = H_E // 2                     # decoder feature before 2x upsample

    d = jax.random.normal(k_d, (N, DEC_C, H_D, W_D), jnp.float32)
    e1 = jax.random.normal(k_e1, (N, ENC_C, H_E, W_E), jnp.float32)
    e2 = jax.random.normal(k_e2, (N, ENC_C, H_E, W_E), jnp.float32)
    params = init_params(k_p, ENC_C, DEC_C, OUT_C, LAYER)

    # Quantize inputs / params to bf16-representable f32 so the bf16 MXU path
    # and the f32 reference see identical operands (isolates kernel math).
    q = lambda t: t.astype(jnp.bfloat16).astype(jnp.float32)
    d, e1, e2 = q(d), q(e1), q(e2)
    params = jax.tree_util.tree_map(q, params)

    fwd = jax.jit(dense_forward)
    out = jax.block_until_ready(fwd(d, [e1, e2], params))
    ref = jax.block_until_ready(_reference_forward(d, [e1, e2], params))

    assert out.shape == (N, OUT_C, H_E, W_E), out.shape
    max_err = float(jnp.max(jnp.abs(out - ref)))
    assert jnp.allclose(out, ref, atol=8e-2, rtol=8e-2), max_err
    print("KERNEL_OK")
</pallas_src>

<mosaic_0001>
module attributes {stable_mosaic.version = 11 : i64} {
  func.func @kernel(%arg0: i32, %arg1: memref<1x16x128xf32, #tpu.memory_space<vmem>>, %arg2: memref<1x16x256xbf16, #tpu.memory_space<vmem>>, %arg3: memref<1x16x128xbf16, #tpu.memory_space<vmem>>, %arg4: memref<128x128xbf16, #tpu.memory_space<vmem>>, %arg5: memref<256x128xbf16, #tpu.memory_space<vmem>>, %arg6: memref<128x128xbf16, #tpu.memory_space<vmem>>, %arg7: memref<1x128xf32, #tpu.memory_space<vmem>>, %arg8: memref<1x128xf32, #tpu.memory_space<vmem>>, %arg9: memref<2x3x128x128xbf16, #tpu.memory_space<vmem>>, %arg10: memref<3x256x128xbf16, #tpu.memory_space<vmem>>, %arg11: memref<1x128xf32, #tpu.memory_space<vmem>>, %arg12: memref<3x128x128xbf16, #tpu.memory_space<vmem>>, %arg13: memref<1x128xf32, #tpu.memory_space<vmem>>, %arg14: memref<1x16x128xf32, #tpu.memory_space<vmem>>) attributes {dimension_semantics = [#tpu.dimension_semantics<parallel>], iteration_bounds = array<i64: 2>, scalar_prefetch = 0 : i64, scratch_operands = 0 : i64, tpu.core_type = #tpu.core_type<tc>, window_params = [{transform_indices = @transform_0, window_bounds = array<i64: 1, 16, 128>}, {transform_indices = @transform_1, window_bounds = array<i64: 1, 16, 256>}, {transform_indices = @transform_2, window_bounds = array<i64: 1, 16, 128>}, {pipeline_mode = #tpu.pipeline_mode<synchronous>, transform_indices = @transform_3, window_bounds = array<i64: 128, 128>}, {pipeline_mode = #tpu.pipeline_mode<synchronous>, transform_indices = @transform_4, window_bounds = array<i64: 256, 128>}, {pipeline_mode = #tpu.pipeline_mode<synchronous>, transform_indices = @transform_5, window_bounds = array<i64: 128, 128>}, {pipeline_mode = #tpu.pipeline_mode<synchronous>, transform_indices = @transform_6, window_bounds = array<i64: 1, 128>}, {pipeline_mode = #tpu.pipeline_mode<synchronous>, transform_indices = @transform_7, window_bounds = array<i64: 1, 128>}, {pipeline_mode = #tpu.pipeline_mode<synchronous>, transform_indices = @transform_8, window_bounds = array<i64: 2, 3, 128, 128>}, {pipeline_mode = #tpu.pipeline_mode<synchronous>, transform_indices = @transform_9, window_bounds = array<i64: 3, 256, 128>}, {pipeline_mode = #tpu.pipeline_mode<synchronous>, transform_indices = @transform_10, window_bounds = array<i64: 1, 128>}, {pipeline_mode = #tpu.pipeline_mode<synchronous>, transform_indices = @transform_11, window_bounds = array<i64: 3, 128, 128>}, {pipeline_mode = #tpu.pipeline_mode<synchronous>, transform_indices = @transform_12, window_bounds = array<i64: 1, 128>}, {transform_indices = @transform_13, window_bounds = array<i64: 1, 16, 128>}]} {
    %c0 = arith.constant 0 : index
    %c0_0 = arith.constant 0 : index
    %c0_1 = arith.constant 0 : index
    %0 = vector.load %arg1[%c0, %c0_0, %c0_1] : memref<1x16x128xf32, #tpu.memory_space<vmem>>, vector<1x16x128xf32>
    %1 = vector.shape_cast %0 : vector<1x16x128xf32> to vector<16x128xf32>
    %c0_2 = arith.constant 0 : index
    %c0_3 = arith.constant 0 : index
    %c0_4 = arith.constant 0 : index
    %2 = vector.load %arg2[%c0_2, %c0_3, %c0_4] : memref<1x16x256xbf16, #tpu.memory_space<vmem>>, vector<1x16x256xbf16>
    %3 = vector.shape_cast %2 : vector<1x16x256xbf16> to vector<16x256xbf16>
    %4 = arith.truncf %1 : vector<16x128xf32> to vector<16x128xbf16>
    %c0_5 = arith.constant 0 : index
    %c0_6 = arith.constant 0 : index
    %5 = vector.load %arg4[%c0_5, %c0_6] : memref<128x128xbf16, #tpu.memory_space<vmem>>, vector<128x128xbf16>
    %cst = arith.constant dense<0.000000e+00> : vector<16x128xf32>
    %6 = tpu.matmul %4, %5, %cst {dimension_numbers = #tpu.dot_dimension_numbers<[1], [0], [0], [1], [0, 0, 1, 1], [], []>} : vector<16x128xbf16>, vector<128x128xbf16>, vector<16x128xf32> -> vector<16x128xf32>
    %c0_7 = arith.constant 0 : index
    %c0_8 = arith.constant 0 : index
    %7 = vector.load %arg5[%c0_7, %c0_8] : memref<256x128xbf16, #tpu.memory_space<vmem>>, vector<256x128xbf16>
    %cst_9 = arith.constant dense<0.000000e+00> : vector<16x128xf32>
    %8 = tpu.matmul %3, %7, %cst_9 {dimension_numbers = #tpu.dot_dimension_numbers<[1], [0], [0], [1], [0, 0, 1, 1], [], []>} : vector<16x256xbf16>, vector<256x128xbf16>, vector<16x128xf32> -> vector<16x128xf32>
    %9 = arith.addf %6, %8 : vector<16x128xf32>
    %c0_10 = arith.constant 0 : index
    %c0_11 = arith.constant 0 : index
    %10 = vector.load %arg7[%c0_10, %c0_11] : memref<1x128xf32, #tpu.memory_space<vmem>>, vector<1x128xf32>
    %11 = vector.broadcast %10 : vector<1x128xf32> to vector<16x128xf32>
    %12 = arith.addf %9, %11 : vector<16x128xf32>
    %cst_12 = arith.constant 0.000000e+00 : f32
    %13 = vector.broadcast %cst_12 : f32 to vector<16x128xf32>
    %14 = arith.maximumf %12, %13 : vector<16x128xf32>
    %15 = arith.truncf %14 : vector<16x128xf32> to vector<16x128xbf16>
    %c0_13 = arith.constant 0 : index
    %c0_14 = arith.constant 0 : index
    %16 = vector.load %arg6[%c0_13, %c0_14] : memref<128x128xbf16, #tpu.memory_space<vmem>>, vector<128x128xbf16>
    %cst_15 = arith.constant dense<0.000000e+00> : vector<16x128xf32>
    %17 = tpu.matmul %15, %16, %cst_15 {dimension_numbers = #tpu.dot_dimension_numbers<[1], [0], [0], [1], [0, 0, 1, 1], [], []>} : vector<16x128xbf16>, vector<128x128xbf16>, vector<16x128xf32> -> vector<16x128xf32>
    %c0_16 = arith.constant 0 : index
    %c0_17 = arith.constant 0 : index
    %18 = vector.load %arg8[%c0_16, %c0_17] : memref<1x128xf32, #tpu.memory_space<vmem>>, vector<1x128xf32>
    %19 = vector.broadcast %18 : vector<1x128xf32> to vector<16x128xf32>
    %20 = arith.addf %17, %19 : vector<16x128xf32>
    %cst_18 = arith.constant 0.000000e+00 : f32
    %21 = vector.broadcast %cst_18 : f32 to vector<16x128xf32>
    %22 = arith.subf %21, %20 : vector<16x128xf32>
    %23 = math.exp %22 : vector<16x128xf32>
    %cst_19 = arith.constant 1.000000e+00 : f32
    %24 = vector.broadcast %cst_19 : f32 to vector<16x128xf32>
    %25 = arith.addf %24, %23 : vector<16x128xf32>
    %cst_20 = arith.constant 1.000000e+00 : f32
    %26 = vector.broadcast %cst_20 : f32 to vector<16x128xf32>
    %27 = arith.divf %26, %25 : vector<16x128xf32>
    %28 = arith.mulf %27, %1 : vector<16x128xf32>
    %c0_21 = arith.constant 0 : index
    %c0_22 = arith.constant 0 : index
    %c0_23 = arith.constant 0 : index
    %29 = vector.load %arg10[%c0_21, %c0_22, %c0_23] : memref<3x256x128xbf16, #tpu.memory_space<vmem>>, vector<1x256x128xbf16>
    %30 = vector.shape_cast %29 : vector<1x256x128xbf16> to vector<256x128xbf16>
    %cst_24 = arith.constant dense<0.000000e+00> : vector<16x128xf32>
    %31 = tpu.matmul %3, %30, %cst_24 {dimension_numbers = #tpu.dot_dimension_numbers<[1], [0], [0], [1], [0, 0, 1, 1], [], []>} : vector<16x256xbf16>, vector<256x128xbf16>, vector<16x128xf32> -> vector<16x128xf32>
    %c1 = arith.constant 1 : index
    %c0_25 = arith.constant 0 : index
    %c0_26 = arith.constant 0 : index
    %32 = vector.load %arg10[%c1, %c0_25, %c0_26] : memref<3x256x128xbf16, #tpu.memory_space<vmem>>, vector<1x256x128xbf16>
    %33 = vector.shape_cast %32 : vector<1x256x128xbf16> to vector<256x128xbf16>
    %cst_27 = arith.constant dense<0.000000e+00> : vector<16x128xf32>
    %34 = tpu.matmul %3, %33, %cst_27 {dimension_numbers = #tpu.dot_dimension_numbers<[1], [0], [0], [1], [0, 0, 1, 1], [], []>} : vector<16x256xbf16>, vector<256x128xbf16>, vector<16x128xf32> -> vector<16x128xf32>
    %c2 = arith.constant 2 : index
    %c0_28 = arith.constant 0 : index
    %c0_29 = arith.constant 0 : index
    %35 = vector.load %arg10[%c2, %c0_28, %c0_29] : memref<3x256x128xbf16, #tpu.memory_space<vmem>>, vector<1x256x128xbf16>
    %36 = vector.shape_cast %35 : vector<1x256x128xbf16> to vector<256x128xbf16>
    %cst_30 = arith.constant dense<0.000000e+00> : vector<16x128xf32>
    %37 = tpu.matmul %3, %36, %cst_30 {dimension_numbers = #tpu.dot_dimension_numbers<[1], [0], [0], [1], [0, 0, 1, 1], [], []>} : vector<16x256xbf16>, vector<256x128xbf16>, vector<16x128xf32> -> vector<16x128xf32>
    %cst_31 = arith.constant 0.000000e+00 : f32
    %38 = vector.broadcast %cst_31 : f32 to vector<1x128xf32>
    %39 = vector.extract_strided_slice %31 {offsets = [0, 0], sizes = [15, 128], strides = [1, 1]} : vector<16x128xf32> to vector<15x128xf32>
    %40 = tpu.concatenate %38, %39 in 0 : vector<1x128xf32>, vector<15x128xf32> -> vector<16x128xf32>
    %41 = vector.extract_strided_slice %37 {offsets = [1, 0], sizes = [15, 128], strides = [1, 1]} : vector<16x128xf32> to vector<15x128xf32>
    %42 = tpu.concatenate %41, %38 in 0 : vector<15x128xf32>, vector<1x128xf32> -> vector<16x128xf32>
    %43 = arith.addf %34, %40 : vector<16x128xf32>
    %44 = arith.addf %43, %42 : vector<16x128xf32>
    %c0_32 = arith.constant 0 : index
    %c0_33 = arith.constant 0 : index
    %c0_34 = arith.constant 0 : index
    %45 = vector.load %arg3[%c0_32, %c0_33, %c0_34] : memref<1x16x128xbf16, #tpu.memory_space<vmem>>, vector<1x16x128xbf16>
    %46 = vector.shape_cast %45 : vector<1x16x128xbf16> to vector<16x128xbf16>
    %c0_35 = arith.constant 0 : index
    %c0_36 = arith.constant 0 : index
    %c0_37 = arith.constant 0 : index
    %c0_38 = arith.constant 0 : index
    %47 = vector.load %arg9[%c0_35, %c0_36, %c0_37, %c0_38] : memref<2x3x128x128xbf16, #tpu.memory_space<vmem>>, vector<1x1x128x128xbf16>
    %48 = vector.shape_cast %47 : vector<1x1x128x128xbf16> to vector<128x128xbf16>
    %cst_39 = arith.constant dense<0.000000e+00> : vector<16x128xf32>
    %49 = tpu.matmul %46, %48, %cst_39 {dimension_numbers = #tpu.dot_dimension_numbers<[1], [0], [0], [1], [0, 0, 1, 1], [], []>} : vector<16x128xbf16>, vector<128x128xbf16>, vector<16x128xf32> -> vector<16x128xf32>
    %c0_40 = arith.constant 0 : index
    %c1_41 = arith.constant 1 : index
    %c0_42 = arith.constant 0 : index
    %c0_43 = arith.constant 0 : index
    %50 = vector.load %arg9[%c0_40, %c1_41, %c0_42, %c0_43] : memref<2x3x128x128xbf16, #tpu.memory_space<vmem>>, vector<1x1x128x128xbf16>
    %51 = vector.shape_cast %50 : vector<1x1x128x128xbf16> to vector<128x128xbf16>
    %cst_44 = arith.constant dense<0.000000e+00> : vector<16x128xf32>
    %52 = tpu.matmul %46, %51, %cst_44 {dimension_numbers = #tpu.dot_dimension_numbers<[1], [0], [0], [1], [0, 0, 1, 1], [], []>} : vector<16x128xbf16>, vector<128x128xbf16>, vector<16x128xf32> -> vector<16x128xf32>
    %c0_45 = arith.constant 0 : index
    %c2_46 = arith.constant 2 : index
    %c0_47 = arith.constant 0 : index
    %c0_48 = arith.constant 0 : index
    %53 = vector.load %arg9[%c0_45, %c2_46, %c0_47, %c0_48] : memref<2x3x128x128xbf16, #tpu.memory_space<vmem>>, vector<1x1x128x128xbf16>
    %54 = vector.shape_cast %53 : vector<1x1x128x128xbf16> to vector<128x128xbf16>
    %cst_49 = arith.constant dense<0.000000e+00> : vector<16x128xf32>
    %55 = tpu.matmul %46, %54, %cst_49 {dimension_numbers = #tpu.dot_dimension_numbers<[1], [0], [0], [1], [0, 0, 1, 1], [], []>} : vector<16x128xbf16>, vector<128x128xbf16>, vector<16x128xf32> -> vector<16x128xf32>
    %cst_50 = arith.constant 0.000000e+00 : f32
    %56 = vector.broadcast %cst_50 : f32 to vector<1x128xf32>
    %57 = vector.extract_strided_slice %49 {offsets = [0, 0], sizes = [15, 128], strides = [1, 1]} : vector<16x128xf32> to vector<15x128xf32>
    %58 = tpu.concatenate %56, %57 in 0 : vector<1x128xf32>, vector<15x128xf32> -> vector<16x128xf32>
    %59 = vector.extract_strided_slice %55 {offsets = [1, 0], sizes = [15, 128], strides = [1, 1]} : vector<16x128xf32> to vector<15x128xf32>
    %60 = tpu.concatenate %59, %56 in 0 : vector<15x128xf32>, vector<1x128xf32> -> vector<16x128xf32>
    %61 = arith.addf %52, %58 : vector<16x128xf32>
    %62 = arith.addf %61, %60 : vector<16x128xf32>
    %63 = arith.addf %44, %62 : vector<16x128xf32>
    %64 = arith.truncf %28 : vector<16x128xf32> to vector<16x128xbf16>
    %c1_51 = arith.constant 1 : index
    %c0_52 = arith.constant 0 : index
    %c0_53 = arith.constant 0 : index
    %c0_54 = arith.constant 0 : index
    %65 = vector.load %arg9[%c1_51, %c0_52, %c0_53, %c0_54] : memref<2x3x128x128xbf16, #tpu.memory_space<vmem>>, vector<1x1x128x128xbf16>
    %66 = vector.shape_cast %65 : vector<1x1x128x128xbf16> to vector<128x128xbf16>
    %cst_55 = arith.constant dense<0.000000e+00> : vector<16x128xf32>
    %67 = tpu.matmul %64, %66, %cst_55 {dimension_numbers = #tpu.dot_dimension_numbers<[1], [0], [0], [1], [0, 0, 1, 1], [], []>} : vector<16x128xbf16>, vector<128x128xbf16>, vector<16x128xf32> -> vector<16x128xf32>
    %c1_56 = arith.constant 1 : index
    %c1_57 = arith.constant 1 : index
    %c0_58 = arith.constant 0 : index
    %c0_59 = arith.constant 0 : index
    %68 = vector.load %arg9[%c1_56, %c1_57, %c0_58, %c0_59] : memref<2x3x128x128xbf16, #tpu.memory_space<vmem>>, vector<1x1x128x128xbf16>
    %69 = vector.shape_cast %68 : vector<1x1x128x128xbf16> to vector<128x128xbf16>
    %cst_60 = arith.constant dense<0.000000e+00> : vector<16x128xf32>
    %70 = tpu.matmul %64, %69, %cst_60 {dimension_numbers = #tpu.dot_dimension_numbers<[1], [0], [0], [1], [0, 0, 1, 1], [], []>} : vector<16x128xbf16>, vector<128x128xbf16>, vector<16x128xf32> -> vector<16x128xf32>
    %c1_61 = arith.constant 1 : index
    %c2_62 = arith.constant 2 : index
    %c0_63 = arith.constant 0 : index
    %c0_64 = arith.constant 0 : index
    %71 = vector.load %arg9[%c1_61, %c2_62, %c0_63, %c0_64] : memref<2x3x128x128xbf16, #tpu.memory_space<vmem>>, vector<1x1x128x128xbf16>
    %72 = vector.shape_cast %71 : vector<1x1x128x128xbf16> to vector<128x128xbf16>
    %cst_65 = arith.constant dense<0.000000e+00> : vector<16x128xf32>
    %73 = tpu.matmul %64, %72, %cst_65 {dimension_numbers = #tpu.dot_dimension_numbers<[1], [0], [0], [1], [0, 0, 1, 1], [], []>} : vector<16x128xbf16>, vector<128x128xbf16>, vector<16x128xf32> -> vector<16x128xf32>
    %cst_66 = arith.constant 0.000000e+00 : f32
    %74 = vector.broadcast %cst_66 : f32 to vector<1x128xf32>
    %75 = vector.extract_strided_slice %67 {offsets = [0, 0], sizes = [15, 128], strides = [1, 1]} : vector<16x128xf32> to vector<15x128xf32>
    %76 = tpu.concatenate %74, %75 in 0 : vector<1x128xf32>, vector<15x128xf32> -> vector<16x128xf32>
    %77 = vector.extract_strided_slice %73 {offsets = [1, 0], sizes = [15, 128], strides = [1, 1]} : vector<16x128xf32> to vector<15x128xf32>
    %78 = tpu.concatenate %77, %74 in 0 : vector<15x128xf32>, vector<1x128xf32> -> vector<16x128xf32>
    %79 = arith.addf %70, %76 : vector<16x128xf32>
    %80 = arith.addf %79, %78 : vector<16x128xf32>
    %81 = arith.addf %63, %80 : vector<16x128xf32>
    %c0_67 = arith.constant 0 : index
    %c0_68 = arith.constant 0 : index
    %82 = vector.load %arg11[%c0_67, %c0_68] : memref<1x128xf32, #tpu.memory_space<vmem>>, vector<1x128xf32>
    %83 = vector.broadcast %82 : vector<1x128xf32> to vector<16x128xf32>
    %84 = arith.addf %81, %83 : vector<16x128xf32>
    %cst_69 = arith.constant 0.000000e+00 : f32
    %85 = vector.broadcast %cst_69 : f32 to vector<16x128xf32>
    %86 = arith.maximumf %84, %85 : vector<16x128xf32>
    %87 = arith.truncf %86 : vector<16x128xf32> to vector<16x128xbf16>
    %c0_70 = arith.constant 0 : index
    %c0_71 = arith.constant 0 : index
    %c0_72 = arith.constant 0 : index
    %88 = vector.load %arg12[%c0_70, %c0_71, %c0_72] : memref<3x128x128xbf16, #tpu.memory_space<vmem>>, vector<1x128x128xbf16>
    %89 = vector.shape_cast %88 : vector<1x128x128xbf16> to vector<128x128xbf16>
    %cst_73 = arith.constant dense<0.000000e+00> : vector<16x128xf32>
    %90 = tpu.matmul %87, %89, %cst_73 {dimension_numbers = #tpu.dot_dimension_numbers<[1], [0], [0], [1], [0, 0, 1, 1], [], []>} : vector<16x128xbf16>, vector<128x128xbf16>, vector<16x128xf32> -> vector<16x128xf32>
    %c1_74 = arith.constant 1 : index
    %c0_75 = arith.constant 0 : index
    %c0_76 = arith.constant 0 : index
    %91 = vector.load %arg12[%c1_74, %c0_75, %c0_76] : memref<3x128x128xbf16, #tpu.memory_space<vmem>>, vector<1x128x128xbf16>
    %92 = vector.shape_cast %91 : vector<1x128x128xbf16> to vector<128x128xbf16>
    %cst_77 = arith.constant dense<0.000000e+00> : vector<16x128xf32>
    %93 = tpu.matmul %87, %92, %cst_77 {dimension_numbers = #tpu.dot_dimension_numbers<[1], [0], [0], [1], [0, 0, 1, 1], [], []>} : vector<16x128xbf16>, vector<128x128xbf16>, vector<16x128xf32> -> vector<16x128xf32>
    %c2_78 = arith.constant 2 : index
    %c0_79 = arith.constant 0 : index
    %c0_80 = arith.constant 0 : index
    %94 = vector.load %arg12[%c2_78, %c0_79, %c0_80] : memref<3x128x128xbf16, #tpu.memory_space<vmem>>, vector<1x128x128xbf16>
    %95 = vector.shape_cast %94 : vector<1x128x128xbf16> to vector<128x128xbf16>
    %cst_81 = arith.constant dense<0.000000e+00> : vector<16x128xf32>
    %96 = tpu.matmul %87, %95, %cst_81 {dimension_numbers = #tpu.dot_dimension_numbers<[1], [0], [0], [1], [0, 0, 1, 1], [], []>} : vector<16x128xbf16>, vector<128x128xbf16>, vector<16x128xf32> -> vector<16x128xf32>
    %cst_82 = arith.constant 0.000000e+00 : f32
    %97 = vector.broadcast %cst_82 : f32 to vector<1x128xf32>
    %98 = vector.extract_strided_slice %90 {offsets = [0, 0], sizes = [15, 128], strides = [1, 1]} : vector<16x128xf32> to vector<15x128xf32>
    %99 = tpu.concatenate %97, %98 in 0 : vector<1x128xf32>, vector<15x128xf32> -> vector<16x128xf32>
    %100 = vector.extract_strided_slice %96 {offsets = [1, 0], sizes = [15, 128], strides = [1, 1]} : vector<16x128xf32> to vector<15x128xf32>
    %101 = tpu.concatenate %100, %97 in 0 : vector<15x128xf32>, vector<1x128xf32> -> vector<16x128xf32>
    %102 = arith.addf %93, %99 : vector<16x128xf32>
    %103 = arith.addf %102, %101 : vector<16x128xf32>
    %c0_83 = arith.constant 0 : index
    %c0_84 = arith.constant 0 : index
    %104 = vector.load %arg13[%c0_83, %c0_84] : memref<1x128xf32, #tpu.memory_space<vmem>>, vector<1x128xf32>
    %105 = vector.broadcast %104 : vector<1x128xf32> to vector<16x128xf32>
    %106 = arith.addf %103, %105 : vector<16x128xf32>
    %cst_85 = arith.constant 0.000000e+00 : f32
    %107 = vector.broadcast %cst_85 : f32 to vector<16x128xf32>
    %108 = arith.maximumf %106, %107 : vector<16x128xf32>
    %c0_86 = arith.constant 0 : index
    %c0_87 = arith.constant 0 : index
    %c0_88 = arith.constant 0 : index
    %109 = vector.load %arg14[%c0_86, %c0_87, %c0_88] : memref<1x16x128xf32, #tpu.memory_space<vmem>>, vector<1x16x128xf32>
    %110 = vector.shape_cast %109 : vector<1x16x128xf32> to vector<16x128xf32>
    %111 = vector.shape_cast %108 : vector<16x128xf32> to vector<1x16x128xf32>
    tpu.vector_store %arg14[%c0_86, %c0_87, %c0_88], %111 {strides = array<i32>} : memref<1x16x128xf32, #tpu.memory_space<vmem>>, vector<1x16x128xf32>,
    return
  }
  func.func @transform_0(%arg0: i32) -> (i32, i32, i32) {
    %c0_i32 = arith.constant 0 : i32
    %c0_i32_0 = arith.constant 0 : i32
    %c0_i32_1 = arith.constant 0 : i32
    return %arg0, %c0_i32, %c0_i32_0 : i32, i32, i32
  }
  func.func @transform_1(%arg0: i32) -> (i32, i32, i32) {
    %c0_i32 = arith.constant 0 : i32
    %c0_i32_0 = arith.constant 0 : i32
    %c0_i32_1 = arith.constant 0 : i32
    return %arg0, %c0_i32, %c0_i32_0 : i32, i32, i32
  }
  func.func @transform_2(%arg0: i32) -> (i32, i32, i32) {
    %c0_i32 = arith.constant 0 : i32
    %c0_i32_0 = arith.constant 0 : i32
    %c0_i32_1 = arith.constant 0 : i32
    return %arg0, %c0_i32, %c0_i32_0 : i32, i32, i32
  }
  func.func @transform_3(%arg0: i32) -> (i32, i32) {
    %c0_i32 = arith.constant 0 : i32
    %c0_i32_0 = arith.constant 0 : i32
    %c0_i32_1 = arith.constant 0 : i32
    return %c0_i32, %c0_i32_0 : i32, i32
  }
  func.func @transform_4(%arg0: i32) -> (i32, i32) {
    %c0_i32 = arith.constant 0 : i32
    %c0_i32_0 = arith.constant 0 : i32
    %c0_i32_1 = arith.constant 0 : i32
    return %c0_i32, %c0_i32_0 : i32, i32
  }
  func.func @transform_5(%arg0: i32) -> (i32, i32) {
    %c0_i32 = arith.constant 0 : i32
    %c0_i32_0 = arith.constant 0 : i32
    %c0_i32_1 = arith.constant 0 : i32
    return %c0_i32, %c0_i32_0 : i32, i32
  }
  func.func @transform_6(%arg0: i32) -> (i32, i32) {
    %c0_i32 = arith.constant 0 : i32
    %c0_i32_0 = arith.constant 0 : i32
    %c0_i32_1 = arith.constant 0 : i32
    return %c0_i32, %c0_i32_0 : i32, i32
  }
  func.func @transform_7(%arg0: i32) -> (i32, i32) {
    %c0_i32 = arith.constant 0 : i32
    %c0_i32_0 = arith.constant 0 : i32
    %c0_i32_1 = arith.constant 0 : i32
    return %c0_i32, %c0_i32_0 : i32, i32
  }
  func.func @transform_8(%arg0: i32) -> (i32, i32, i32, i32) {
    %c0_i32 = arith.constant 0 : i32
    %c0_i32_0 = arith.constant 0 : i32
    %c0_i32_1 = arith.constant 0 : i32
    %c0_i32_2 = arith.constant 0 : i32
    %c0_i32_3 = arith.constant 0 : i32
    return %c0_i32, %c0_i32_0, %c0_i32_1, %c0_i32_2 : i32, i32, i32, i32
  }
  func.func @transform_9(%arg0: i32) -> (i32, i32, i32) {
    %c0_i32 = arith.constant 0 : i32
    %c0_i32_0 = arith.constant 0 : i32
    %c0_i32_1 = arith.constant 0 : i32
    %c0_i32_2 = arith.constant 0 : i32
    return %c0_i32, %c0_i32_0, %c0_i32_1 : i32, i32, i32
  }
  func.func @transform_10(%arg0: i32) -> (i32, i32) {
    %c0_i32 = arith.constant 0 : i32
    %c0_i32_0 = arith.constant 0 : i32
    %c0_i32_1 = arith.constant 0 : i32
    return %c0_i32, %c0_i32_0 : i32, i32
  }
  func.func @transform_11(%arg0: i32) -> (i32, i32, i32) {
    %c0_i32 = arith.constant 0 : i32
    %c0_i32_0 = arith.constant 0 : i32
    %c0_i32_1 = arith.constant 0 : i32
    %c0_i32_2 = arith.constant 0 : i32
    return %c0_i32, %c0_i32_0, %c0_i32_1 : i32, i32, i32
  }
  func.func @transform_12(%arg0: i32) -> (i32, i32) {
    %c0_i32 = arith.constant 0 : i32
    %c0_i32_0 = arith.constant 0 : i32
    %c0_i32_1 = arith.constant 0 : i32
    return %c0_i32, %c0_i32_0 : i32, i32
  }
  func.func @transform_13(%arg0: i32) -> (i32, i32, i32) {
    %c0_i32 = arith.constant 0 : i32
    %c0_i32_0 = arith.constant 0 : i32
    %c0_i32_1 = arith.constant 0 : i32
    return %arg0, %c0_i32, %c0_i32_0 : i32, i32, i32
  }
}

</mosaic_0001>

<bundles_post_ra>
// kernel: tile.23
= control target key start
LH: loop header
LB: loop body
LE: loop exit
PB: predicated region body
PF: predicated region fallthrough
CT: control target
= control target key end

     0   :  { %s28_s0 = inlined_call_operand.vmem [shape: f32[8], index: 0, kind: input, shape index: {}]   ;;  %s29_s1 = inlined_call_operand.vmem [shape: f32[16,8], index: 1, kind: output, shape index: {}]  }
   0x1   :  { %v4_v0 = vld [vmem:[%s28_s0] ss:$0 sm:$0xff] }
   0x2   :  { %5 = vst [vmem:[%s29_s1] sm:$0xff] %v4_v0  ;;  %8 = vst [vmem:[%s29_s1 + $0x8] sm:$0xff] %v4_v0 }

// kernel: tile.24
= control target key start
LH: loop header
LB: loop body
LE: loop exit
PB: predicated region body
PF: predicated region fallthrough
CT: control target
= control target key end

     0   :  { %s131_s10 = smov 120   ;;  %s132_s11 = smov 104   ;;  %vm3_vm0 = vcmask 64512   ;;  %vm9_vm1 = vcmask 1048512   ;;  %vm15_vm2 = vcmask 982912   ;;  %vm21_vm3 = vcmask 917312   ;;  %s207_s0 = inlined_call_operand.vmem [shape: f32[16,8], index: 0, kind: input, shape index: {}]   ;;  %s208_s1 = inlined_call_operand.vmem [shape: f32[1,128], index: 1, kind: output, shape index: {}]  }
   0x1   :  { %v101_v0 = vld [vmem:[%s207_s0 + $0xf] sm:$0x1]   ;;  %v103_v1 = vld [vmem:[%s207_s0 + $0xd] sm:$0x1]   ;;  %v102_v2 = vld [vmem:[%s207_s0 + $0xe] sm:$0x1]  }
   0x2   :  { %7 = vrot.lane.b32.xlu0 %v101_v0, %s131_s10  ;;  %19 = vrot.lane.b32.xlu1 %v103_v1, %s132_s11  ;;  %v104_v3 = vld [vmem:[%s207_s0 + $0xc] sm:$0x1]   ;;  %s133_s16 = smov 112   ;;  %s134_s17 = smov 96   ;;  %v105_v4 = vld [vmem:[%s207_s0 + $0xb] sm:$0x1]  }
   0x3   :  { %v106_v5 = vld [vmem:[%s207_s0 + $0xa] sm:$0x1]   ;;  %v2_v6 = vld [vmem:[%s207_s0] sm:$0x1]   ;;  %s135_s24 = smov 88   ;;  %s136_s25 = smov 80  }
   0x4   :  { %4 = vst.msk [vmem:[#allocation0] sm:$0x1] %vm3_vm0, %v2_v6   ;;  %v107_v7 = vld [vmem:[%s207_s0 + $0x9] sm:$0x1]   ;;  %v108_v8 = vld [vmem:[%s207_s0 + $0x8] sm:$0x1]  }
   0x5   :  { %s137_s30 = smov 72   ;;  %s138_s2 = smov 64   ;;  %v109_v9 = vld [vmem:[%s207_s0 + $0x7] sm:$0x1]   ;;  %v110_v10 = vld [vmem:[%s207_s0 + $0x6] sm:$0x1]  }
   0x6   :  { %13 = vrot.lane.b32.xlu0 %v102_v2, %s133_s16  ;;  %25 = vrot.lane.b32.xlu1 %v104_v3, %s134_s17  ;;  %s139_s7 = smov 56   ;;  %s140_s8 = smov 48   ;;  %v111_v11 = vld [vmem:[%s207_s0 + $0x5] sm:$0x1]   ;;  %v112_v12 = vld [vmem:[%s207_s0 + $0x4] sm:$0x1]  }
   0x7   :  { %s141_s13 = smov 40   ;;  %s142_s14 = smov 32   ;;  %v113_v13 = vld [vmem:[%s207_s0 + $0x3] sm:$0x1]   ;;  %v114_v14 = vld [vmem:[%s207_s0 + $0x2] sm:$0x1]  }
   0x8   :  { %s143_s19 = smov 24   ;;  %s144_s20 = smov 16   ;;  %v115_v15 = vld [vmem:[%s207_s0 + $0x1] sm:$0x1]   ;;  %vm27_vm4 = vcmask 851712   ;;  %vm33_vm5 = vcmask 786112  }
   0x9   :  { %s145_s0 = smov 8   ;;  %vm39_vm6 = vcmask 720512   ;;  %vm45_vm7 = vcmask 654912   ;;  %vm51_vm8 = vcmask 589312   ;;  %vm57_vm9 = vcmask 523712  }
   0xa   :  { %31 = vrot.lane.b32.xlu0 %v105_v4, %s135_s24  ;;  %37 = vrot.lane.b32.xlu1 %v106_v5, %s136_s25  ;;  %vm63_vm10 = vcmask 458112   ;;  %vm69_vm11 = vcmask 392512   ;;  %vm75_vm12 = vcmask 326912   ;;  %vm81_vm13 = vcmask 261312  }
   0xb   :  { %vm87_vm14 = vcmask 195712   ;;  %vm93_vm15 = vcmask 130112  }
   0xe   :  { %43 = vrot.lane.b32.xlu0 %v107_v7, %s137_s30  ;;  %49 = vrot.lane.b32.xlu1 %v108_v8, %s138_s2 }
  0x12   :  { %55 = vrot.lane.b32.xlu0 %v109_v9, %s139_s7  ;;  %61 = vrot.lane.b32.xlu1 %v110_v10, %s140_s8 }
  0x16   :  { %67 = vrot.lane.b32.xlu0 %v111_v11, %s141_s13  ;;  %73 = vrot.lane.b32.xlu1 %v112_v12, %s142_s14 }
  0x1a   :  { %79 = vrot.lane.b32.xlu0 %v113_v13, %s143_s19  ;;  %85 = vrot.lane.b32.xlu1 %v114_v14, %s144_s20 }
  0x1e   :  { %91 = vrot.lane.b32.xlu0 %v115_v15, %s145_s0 }
  0x74   :  { %v8_v16 = vpop.permute.xlu0 %7   ;;  %v20_v17 = vpop.permute.xlu1 %19  }
  0x75   :  { %10 = vst.msk [vmem:[#allocation0] sm:$0x1] %vm9_vm1, %v8_v16  }
  0x78   :  { %v14_v18 = vpop.permute.xlu0 %13   ;;  %v26_v19 = vpop.permute.xlu1 %25  }
  0x79   :  { %16 = vst.msk [vmem:[#allocation0] sm:$0x1] %vm15_vm2, %v14_v18  }
  0x7a   :  { %22 = vst.msk [vmem:[#allocation0] sm:$0x1] %vm21_vm3, %v20_v17  }
  0x7b   :  { %28 = vst.msk [vmem:[#allocation0] sm:$0x1] %vm27_vm4, %v26_v19  }
  0x7c   :  { %v32_v20 = vpop.permute.xlu0 %31   ;;  %v38_v21 = vpop.permute.xlu1 %37  }
  0x7d   :  { %34 = vst.msk [vmem:[#allocation0] sm:$0x1] %vm33_vm5, %v32_v20  }
  0x7e   :  { %40 = vst.msk [vmem:[#allocation0] sm:$0x1] %vm39_vm6, %v38_v21  }
  0x80   :  { %v44_v22 = vpop.permute.xlu0 %43   ;;  %v50_v23 = vpop.permute.xlu1 %49  }
  0x81   :  { %46 = vst.msk [vmem:[#allocation0] sm:$0x1] %vm45_vm7, %v44_v22  }
  0x82   :  { %52 = vst.msk [vmem:[#allocation0] sm:$0x1] %vm51_vm8, %v50_v23  }
  0x84   :  { %v56_v24 = vpop.permute.xlu0 %55   ;;  %v62_v25 = vpop.permute.xlu1 %61  }
  0x85   :  { %58 = vst.msk [vmem:[#allocation0] sm:$0x1] %vm57_vm9, %v56_v24  }
  0x86   :  { %64 = vst.msk [vmem:[#allocation0] sm:$0x1] %vm63_vm10, %v62_v25  }
  0x88   :  { %v68_v26 = vpop.permute.xlu0 %67   ;;  %v74_v27 = vpop.permute.xlu1 %73  }
  0x89   :  { %70 = vst.msk [vmem:[#allocation0] sm:$0x1] %vm69_vm11, %v68_v26  }
  0x8a   :  { %76 = vst.msk [vmem:[#allocation0] sm:$0x1] %vm75_vm12, %v74_v27  }
  0x8c   :  { %v80_v28 = vpop.permute.xlu0 %79   ;;  %v86_v29 = vpop.permute.xlu1 %85  }
  0x8d   :  { %82 = vst.msk [vmem:[#allocation0] sm:$0x1] %vm81_vm13, %v80_v28  }
  0x8e   :  { %88 = vst.msk [vmem:[#allocation0] sm:$0x1] %vm87_vm14, %v86_v29  }
  0x90   :  { %v92_v30 = vpop.permute.xlu0 %91  }
  0x91   :  { %94 = vst.msk [vmem:[#allocation0] sm:$0x1] %vm93_vm15, %v92_v30  }
  0x98   :  { %v98_v31 = vld [vmem:[#allocation0] sm:$0x1] }
  0x99   :  { %100 = vst [vmem:[%s208_s1] sm:$0x1] %v98_v31 }

// kernel: dense_forward.1
= control target key start
LH: loop header
LB: loop body
LE: loop exit
PB: predicated region body
PF: predicated region fallthrough
CT: control target
= control target key end

     0   :  { %s3578_s25 = smov 0   ;;  %s4247_s0 = inlined_call_operand.vmem [shape: f32[2,16,128], index: 0, kind: input, shape index: {}]   ;;  %s4248_s1 = inlined_call_operand.vmem [shape: bf16[2,16,256], index: 1, kind: input, shape index: {}]   ;;  %s4249_s2 = inlined_call_operand.vmem [shape: bf16[2,16,128], index: 2, kind: input, shape index: {}]   ;;  %s4250_s3 = inlined_call_operand.vmem [shape: bf16[128,128], index: 3, kind: input, shape index: {}]   ;;  %s4251_s4 = inlined_call_operand.vmem [shape: bf16[256,128], index: 4, kind: input, shape index: {}]   ;;  %s4252_s5 = inlined_call_operand.vmem [shape: bf16[128,128], index: 5, kind: input, shape index: {}]   ;;  %s4253_s6 = inlined_call_operand.vmem [shape: f32[1,128], index: 6, kind: input, shape index: {}]   ;;  %s4254_s7 = inlined_call_operand.vmem [shape: f32[1,128], index: 7, kind: input, shape index: {}]   ;;  %s4255_s8 = inlined_call_operand.vmem [shape: bf16[2,3,128,128], index: 8, kind: input, shape index: {}]   ;;  %s4256_s9 = inlined_call_operand.vmem [shape: bf16[3,256,128], index: 9, kind: input, shape index: {}]   ;;  %s4257_s10 = inlined_call_operand.vmem [shape: f32[1,128], index: 10, kind: input, shape index: {}]   ;;  %s4258_s11 = inlined_call_operand.vmem [shape: bf16[3,128,128], index: 11, kind: input, shape index: {}]   ;;  %s4259_s12 = inlined_call_operand.vmem [shape: f32[1,128], index: 12, kind: input, shape index: {}]   ;;  %s4260_s13 = inlined_call_operand.vmem [shape: f32[2,16,128], index: 13, kind: output, shape index: {}]  }
   0x1 LB: > { %s2561_s26 = sadd.s32 4294967295, %s3504_s25   ;;  %p2565_p0 = scmp.ge.s32.totalorder %s3504_s25, 1  ;;  %s3504_s25 = sphi %s3578_s25, %s23_s25  }
   0x2   : > { %p407_p1 = scmp.lt.s32.totalorder %s3504_s25, 3 }
   0x4   : > { %p408_p2 = pnand %p2565_p0, %p407_p1 }
   0x5   : > { %v3332_v0 = vld [vmem:[%s4251_s4 + $0x40] sm:$0xff] (!%p408_p2)   ;;  %v3506_v1 = vmov (!%p408_p2), 0.0   ;;  %v3335_v4 = vld [vmem:[%s4251_s4 + $0x48] sm:$0xff] (!%p408_p2)   ;;  %vm3507_vm0 = vmmov (!%p408_p2), 0   ;;  %v3338_v7 = vld [vmem:[%s4251_s4 + $0x50] sm:$0xff] (!%p408_p2)   ;;  %p461_p3 = scmp.lt.s32.totalorder (!%p408_p2), %s2561_s26, 1 }
   0x6   : > { %411 = sbr.rel (%p408_p2) target bundleno = 1024 (0x400), region = 72  ;;  %3102 = vmatprep.subr.bf16.mxu1 (!%p408_p2), %v3506_v1  ;;  %v3333_v2 = vld [vmem:[%s4251_s4] sm:$0xff] (!%p408_p2)   ;;  %2915 = vmatprep.subr.bf16.mxu0 (!%p408_p2), %v3332_v0  ;;  %v3336_v5 = vld [vmem:[%s4251_s4 + $0x8] sm:$0xff] (!%p408_p2)   ;;  %v3339_v8 = vld [vmem:[%s4251_s4 + $0x10] sm:$0xff] (!%p408_p2)   ;;  %vm1283_vm1 = vcmask (!%p408_p2), 1040384   ;;  %vm1292_vm2 = vcmask (!%p408_p2), 1046528  }
   0x7   : > { %v3334_v3 = vld [vmem:[%s4250_s3] sm:$0xff] (!%p408_p2)   ;;  %2916 = vmatpush3.bf16.msra.mxu0 (!%p408_p2), %v3333_v2  ;;  %3118 = vmatprep.mubr.msk.bf16.mxu1 (!%p408_p2), %vm3507_vm0, %v3506_v1  ;;  %v3337_v6 = vld [vmem:[%s4250_s3 + $0x8] sm:$0xff] (!%p408_p2)   ;;  %v3340_v9 = vld [vmem:[%s4250_s3 + $0x10] sm:$0xff] (!%p408_p2)  }
   0x8   : > { %3103 = vmatpush3.bf16.msra.mxu1 (!%p408_p2), %v3334_v3  ;;  %2917 = vmatprep.subr.bf16.mxu0 (!%p408_p2), %v3335_v4  ;;  %v3341_v10 = vld [vmem:[%s4251_s4 + $0x58] sm:$0xff] (!%p408_p2)   ;;  %v3344_v13 = vld [vmem:[%s4251_s4 + $0x60] sm:$0xff] (!%p408_p2)   ;;  %v3347_v16 = vld [vmem:[%s4251_s4 + $0x68] sm:$0xff] (!%p408_p2)  }
   0x9   : > { %3104 = vmatprep.subr.bf16.mxu1 (!%p408_p2), %v3506_v1  ;;  %v3342_v11 = vld [vmem:[%s4251_s4 + $0x18] sm:$0xff] (!%p408_p2)   ;;  %v3345_v14 = vld [vmem:[%s4251_s4 + $0x20] sm:$0xff] (!%p408_p2)   ;;  %v3348_v17 = vld [vmem:[%s4251_s4 + $0x28] sm:$0xff] (!%p408_p2)  }
   0xa   : > { %v3343_v12 = vld [vmem:[%s4250_s3 + $0x18] sm:$0xff] (!%p408_p2)   ;;  %v3346_v15 = vld [vmem:[%s4250_s3 + $0x20] sm:$0xff] (!%p408_p2)   ;;  %v3349_v18 = vld [vmem:[%s4250_s3 + $0x28] sm:$0xff] (!%p408_p2)  }
   0xb   : > { %2918 = vmatpush3.bf16.msra.mxu0 (!%p408_p2), %v3336_v5  ;;  %v3350_v19 = vld [vmem:[%s4251_s4 + $0x70] sm:$0xff] (!%p408_p2)   ;;  %v3353_v22 = vld [vmem:[%s4251_s4 + $0x78] sm:$0xff] (!%p408_p2)   ;;  %v3359_v29 = vld [vmem:[%s4252_s5] sm:$0xff] (!%p408_p2)  }
   0xc   : > { %3105 = vmatpush3.bf16.msra.mxu1 (!%p408_p2), %v3337_v6  ;;  %2919 = vmatprep.subr.bf16.mxu0 (!%p408_p2), %v3338_v7  ;;  %v3351_v20 = vld [vmem:[%s4251_s4 + $0x30] sm:$0xff] (!%p408_p2)   ;;  %v3354_v24 = vld [vmem:[%s4251_s4 + $0x38] sm:$0xff] (!%p408_p2)   ;;  %v3360_v31 = vld [vmem:[%s4252_s5 + $0x8] sm:$0xff] (!%p408_p2)  }
   0xd   : > { %3106 = vmatprep.subr.bf16.mxu1 %v3506_v1  ;;  %s4262_s26 = smov (!%p461_p3, %s2561_s26), 1  ;;  %v3352_v21 = vld [vmem:[%s4250_s3 + $0x30] sm:$0xff]   ;;  %v3355_v25 = vld [vmem:[%s4250_s3 + $0x38] sm:$0xff]   ;;  %v3363_v34 = vld [vmem:[%s4252_s5 + $0x20] sm:$0xff]  }
   0xe   : > { %s3651_s14 = sshll.u32 %s4262_s26, 4  ;;  %v3361_v32 = vld [vmem:[%s4252_s5 + $0x10] sm:$0xff]   ;;  %v3362_v33 = vld [vmem:[%s4252_s5 + $0x18] sm:$0xff]   ;;  %v3364_v35 = vld [vmem:[%s4252_s5 + $0x28] sm:$0xff]  }
   0xf   : > { %2920 = vmatpush3.bf16.msra.mxu0 %v3339_v8  ;;  %s470_s23 = scalar_lea.vmem %s4248_s1, %s3651_s14  ;;  %s3679_s16 = scalar_lea.vmem %s4247_s0, %s3651_s14  ;;  %v3365_v36 = vld [vmem:[%s4252_s5 + $0x30] sm:$0xff]   ;;  %v3366_v37 = vld [vmem:[%s4252_s5 + $0x38] sm:$0xff]   ;;  %v3367_v38 = vld [vmem:[%s4256_s9 + $0x40] sm:$0xff]  }
  0x10   : > { %3107 = vmatpush3.bf16.msra.mxu1 %v3340_v9  ;;  %2921 = vmatprep.subr.bf16.mxu0 %v3341_v10  ;;  %v3673_v23 = vld [vmem:[%s470_s23 + $0x4] ss:$8 sps:$4 sm:$0xff]   ;;  %v3692_v28 = vld [vmem:[%s470_s23] ss:$8 sps:$4 sm:$0xff]   ;;  %v3375_v43 = vld [vmem:[%s4256_s9 + $0x50] sm:$0xff]   ;;  %s2913_s23 = sshll.u32 %s4262_s26, 3  ;;  %s480_s28 = scalar_lea.vmem %s4260_s13, %s3651_s14 }
  0x11   : > { %3108 = vmatprep.subr.bf16.mxu1 %v3506_v1  ;;  %673 = vmatprep.mubr.bf16.mxu0 %v3673_v23  ;;  %v482_v26 = vld [vmem:[%s3679_s16] sm:$0xff]  ;;  %v483_v27 = vld [vmem:[%s3679_s16 + $0x8] sm:$0xff]  ;;  %v3376_v44 = vld [vmem:[%s4256_s9 + $0x10] sm:$0xff]   ;;  %s475_s17 = scalar_lea.vmem %s4249_s2, %s2913_s23 }
  0x12   : > { %v486_v30 = vpack.c.bf16 %v483_v27, %v482_v26  ;;  %v3368_v39 = vld [vmem:[%s4256_s9] sm:$0xff]   ;;  %v3371_v41 = vld [vmem:[%s4256_s9 + $0x48] sm:$0xff]   ;;  %v3379_v45 = vld [vmem:[%s4256_s9 + $0x58] sm:$0xff]  }
  0x13   : > { %2922 = vmatpush3.bf16.msra.mxu0 %v3342_v11  ;;  %v3369_v40 = vld [vmem:[%s4256_s9 + $0x140] sm:$0xff]   ;;  %v3372_v42 = vld [vmem:[%s4256_s9 + $0x8] sm:$0xff]   ;;  %v3380_v46 = vld [vmem:[%s4256_s9 + $0x18] sm:$0xff]  }
  0x14   : > { %3109 = vmatpush3.bf16.msra.mxu1 %v3343_v12  ;;  %2923 = vmatprep.subr.bf16.mxu0 %v3344_v13  ;;  %v3383_v47 = vld [vmem:[%s4256_s9 + $0x60] sm:$0xff]   ;;  %v3387_v49 = vld [vmem:[%s4256_s9 + $0x68] sm:$0xff]   ;;  %v3391_v51 = vld [vmem:[%s4256_s9 + $0x70] sm:$0xff]  }
  0x15   : > { %3110 = vmatprep.subr.bf16.mxu1 %v3506_v1  ;;  %v3384_v48 = vld [vmem:[%s4256_s9 + $0x20] sm:$0xff]   ;;  %v3388_v50 = vld [vmem:[%s4256_s9 + $0x28] sm:$0xff]   ;;  %v3392_v52 = vld [vmem:[%s4256_s9 + $0x30] sm:$0xff]  }
  0x16   : > { %v3395_v53 = vld [vmem:[%s4256_s9 + $0x78] sm:$0xff]   ;;  %v3399_v55 = vld [vmem:[%s4256_s9 + $0xc0] sm:$0xff]   ;;  %v3402_v57 = vld [vmem:[%s4256_s9 + $0xc8] sm:$0xff]  }
  0x17   : > { %2924 = vmatpush3.bf16.msra.mxu0 %v3345_v14  ;;  %v3396_v54 = vld [vmem:[%s4256_s9 + $0x38] sm:$0xff]   ;;  %v3400_v56 = vld [vmem:[%s4256_s9 + $0x80] sm:$0xff]   ;;  %v3403_v58 = vld [vmem:[%s4256_s9 + $0x88] sm:$0xff]  }
  0x18   : > { %3111 = vmatpush3.bf16.msra.mxu1 %v3346_v15  ;;  %2925 = vmatprep.subr.bf16.mxu0 %v3347_v16  ;;  %v3405_v59 = vld [vmem:[%s4256_s9 + $0xd0] sm:$0xff]   ;;  %v3408_v61 = vld [vmem:[%s4256_s9 + $0xd8] sm:$0xff]   ;;  %v3411_v63 = vld [vmem:[%s4256_s9 + $0xe0] sm:$0xff]  }
  0x19   : > { %3112 = vmatprep.subr.bf16.mxu1 %v3506_v1  ;;  %v3406_v60 = vld [vmem:[%s4256_s9 + $0x90] sm:$0xff]   ;;  %v3409_v62 = vld [vmem:[%s4256_s9 + $0x98] sm:$0xff]   ;;  %v3412_v0 = vld [vmem:[%s4256_s9 + $0xa0] sm:$0xff]  }
  0x1a   : > { %v3414_v2 = vld [vmem:[%s4256_s9 + $0xe8] sm:$0xff]   ;;  %v3417_v4 = vld [vmem:[%s4256_s9 + $0xf0] sm:$0xff]   ;;  %v3420_v6 = vld [vmem:[%s4256_s9 + $0xf8] sm:$0xff]  }
  0x1b   : > { %2926 = vmatpush3.bf16.msra.mxu0 %v3348_v17  ;;  %v3415_v3 = vld [vmem:[%s4256_s9 + $0xa8] sm:$0xff]   ;;  %v3418_v5 = vld [vmem:[%s4256_s9 + $0xb0] sm:$0xff]   ;;  %v3421_v7 = vld [vmem:[%s4256_s9 + $0xb8] sm:$0xff]  }
  0x1c   : > { %3113 = vmatpush3.bf16.msra.mxu1 %v3349_v18  ;;  %2927 = vmatprep.subr.bf16.mxu0 %v3350_v19  ;;  %v3423_v8 = vld [vmem:[%s4255_s8 + $0x80] sm:$0xff]   ;;  %v3426_v9 = vld [vmem:[%s4255_s8 + $0x88] sm:$0xff]   ;;  %v3428_v10 = vld [vmem:[%s4255_s8 + $0x90] sm:$0xff]  }
  0x1d   : > { %3114 = vmatprep.subr.bf16.mxu1 %v3506_v1  ;;  %v3430_v11 = vld [vmem:[%s4255_s8 + $0x98] sm:$0xff]   ;;  %v3432_v12 = vld [vmem:[%s4255_s8 + $0xa0] sm:$0xff]   ;;  %v3434_v13 = vld [vmem:[%s4255_s8 + $0xa8] sm:$0xff]  }
  0x1e   : > { %v3436_v14 = vld [vmem:[%s4255_s8 + $0xb0] sm:$0xff]   ;;  %v3438_v15 = vld [vmem:[%s4255_s8 + $0xb8] sm:$0xff]   ;;  %v3870_v16 = vld [vmem:[%s475_s17] sm:$0xff]  }
  0x1f   : > { %2928 = vmatpush3.bf16.msra.mxu0 %v3351_v20 }
  0x20   : > { %3115 = vmatpush3.bf16.msra.mxu1 %v3352_v21  ;;  %2929 = vmatprep.subr.bf16.mxu0 %v3353_v22 }
  0x21   : > { %3116 = vmatprep.subr.bf16.mxu1 %v3506_v1 }
  0x23   : > { %2930 = vmatpush3.bf16.msra.mxu0 %v3354_v24  ;;  %v2600_v24 = vld [vmem:[%s4253_s6] ss:$0 sm:$0xff] }
  0x24   : > { %3117 = vmatpush3.bf16.msra.mxu1 %v3355_v25  ;;  %3122 = vmatprep.subr.bf16.mxu0 %v3506_v1 }
  0x25   : > { %2955 = vmatprep.subr.bf16.mxu1 %v3367_v38  ;;  %v3373_v38 = vld [vmem:[%s4256_s9 + $0x148] sm:$0xff]  }
  0x26   : > { %674 = vmatmul.mubr.bf16.vlgmr.msra.gmra.mrb[0].mxu0 %v3692_v28 }
  0x27   : > { %3119 = vmatmul.mubr.bf16.vlgmr.msra.gmra.mrb[0].mxu1 %v486_v30  ;;  %3123 = vmatpush3.bf16.msra.mxu0 %v3359_v29 }
  0x28   : > { %3124 = vmatprep.subr.bf16.mxu0 %v3506_v1  ;;  %3138 = vmatprep.mubr.msk.bf16.mxu0 %vm3507_vm0, %v3506_v1 }
  0x29   : > { %1069 = vmatprep.mubr.bf16.mxu1 %v3673_v23  ;;  %2956 = vmatpush3.bf16.msra.mxu1 %v3368_v39  ;;  %v3374_v39 = vld [vmem:[%s4256_s9 + $0x108] sm:$0xff]  }
  0x2a   : > { %2957 = vmatprep.subr.bf16.mxu1 %v3371_v41  ;;  %v3378_v41 = vld [vmem:[%s4256_s9 + $0x110] sm:$0xff]  }
  0x2b   : > { %3125 = vmatpush3.bf16.msra.mxu0 %v3360_v31 }
  0x2c   : > { %3126 = vmatprep.subr.bf16.mxu0 %v3506_v1 }
  0x2d   : > { %2958 = vmatpush3.bf16.msra.mxu1 %v3372_v42  ;;  %v3381_v42 = vld [vmem:[%s4256_s9 + $0x158] sm:$0xff]  }
  0x2e   : > { %2959 = vmatprep.subr.bf16.mxu1 %v3375_v43  ;;  %v3385_v43 = vld [vmem:[%s4256_s9 + $0x160] sm:$0xff]  }
  0x2f   : > { %3127 = vmatpush3.bf16.msra.mxu0 %v3361_v32 }
  0x30   : > { %3128 = vmatprep.subr.bf16.mxu0 %v3506_v1 }
  0x31   : > { %2960 = vmatpush3.bf16.msra.mxu1 %v3376_v44  ;;  %v3386_v44 = vld [vmem:[%s4256_s9 + $0x120] sm:$0xff]  }
  0x32   : > { %2961 = vmatprep.subr.bf16.mxu1 %v3379_v45  ;;  %v3389_v45 = vld [vmem:[%s4256_s9 + $0x168] sm:$0xff]  }
  0x33   : > { %3129 = vmatpush3.bf16.msra.mxu0 %v3362_v33 }
  0x34   : > { %3130 = vmatprep.subr.bf16.mxu0 %v3506_v1 }
  0x35   : > { %2962 = vmatpush3.bf16.msra.mxu1 %v3380_v46  ;;  %v3390_v46 = vld [vmem:[%s4256_s9 + $0x128] sm:$0xff]  }
  0x36   : > { %2963 = vmatprep.subr.bf16.mxu1 %v3383_v47  ;;  %v3393_v47 = vld [vmem:[%s4256_s9 + $0x170] sm:$0xff]  }
  0x37   : > { %3131 = vmatpush3.bf16.msra.mxu0 %v3363_v34 }
  0x38   : > { %3132 = vmatprep.subr.bf16.mxu0 %v3506_v1 }
  0x39   : > { %2964 = vmatpush3.bf16.msra.mxu1 %v3384_v48  ;;  %v3394_v48 = vld [vmem:[%s4256_s9 + $0x130] sm:$0xff]  }
  0x3a   : > { %2965 = vmatprep.subr.bf16.mxu1 %v3387_v49  ;;  %v3397_v49 = vld [vmem:[%s4256_s9 + $0x178] sm:$0xff]  }
  0x3b   : > { %3133 = vmatpush3.bf16.msra.mxu0 %v3364_v35 }
  0x3c   : > { %3134 = vmatprep.subr.bf16.mxu0 %v3506_v1 }
  0x3d   : > { %2966 = vmatpush3.bf16.msra.mxu1 %v3388_v50  ;;  %v3398_v50 = vld [vmem:[%s4256_s9 + $0x138] sm:$0xff]  }
  0x3e   : > { %2967 = vmatprep.subr.bf16.mxu1 %v3391_v51  ;;  %v3401_v51 = vld [vmem:[%s4255_s8] sm:$0xff]  }
  0x3f   : > { %3135 = vmatpush3.bf16.msra.mxu0 %v3365_v36  ;;  %v3370_v36 = vld [vmem:[%s4256_s9 + $0x100] sm:$0xff]  }
  0x40   : > { %3136 = vmatprep.subr.bf16.mxu0 %v3506_v1 }
  0x41   : > { %2968 = vmatpush3.bf16.msra.mxu1 %v3392_v52  ;;  %v3404_v52 = vld [vmem:[%s4255_s8 + $0x8] sm:$0xff]  }
  0x42   : > { %2969 = vmatprep.subr.bf16.mxu1 %v3395_v53  ;;  %v3407_v53 = vld [vmem:[%s4255_s8 + $0x10] sm:$0xff]  }
  0x43   : > { %3137 = vmatpush3.bf16.msra.mxu0 %v3366_v37 }
  0x44   : > { %2977 = vmatprep.subr.bf16.mxu0 %v3369_v40  ;;  %v3377_v40 = vld [vmem:[%s4256_s9 + $0x150] sm:$0xff]  }
  0x45   : > { %2970 = vmatpush3.bf16.msra.mxu1 %v3396_v54  ;;  %v3413_v54 = vld [vmem:[%s4255_s8 + $0x20] sm:$0xff]  }
  0x46   : > { %2999 = vmatprep.subr.bf16.mxu1 %v3399_v55  ;;  %v3416_v55 = vld [vmem:[%s4255_s8 + $0x28] sm:$0xff]  }
  0x48   : > { %1070 = vmatmul.mubr.bf16.vlgmr.msra.gmra.mrb[4].mxu1 %v3692_v28 }
  0x49   : > { %3000 = vmatpush3.bf16.msra.mxu1 %v3400_v56  ;;  %1427 = vmatprep.mubr.bf16.mxu1 %v3673_v23  ;;  %v3419_v56 = vld [vmem:[%s4255_s8 + $0x30] sm:$0xff]  }
  0x4a   : > { %3001 = vmatprep.subr.bf16.mxu1 %v3402_v57  ;;  %v3422_v57 = vld [vmem:[%s4255_s8 + $0x38] sm:$0xff]  }
  0x4d   : > { %3002 = vmatpush3.bf16.msra.mxu1 %v3403_v58  ;;  %v3425_v58 = vld [vmem:[%s4255_s8 + $0x40] sm:$0xff]  }
  0x4e   : > { %3003 = vmatprep.subr.bf16.mxu1 %v3405_v59  ;;  %v3427_v59 = vld [vmem:[%s4255_s8 + $0x48] sm:$0xff]  }
  0x51   : > { %3004 = vmatpush3.bf16.msra.mxu1 %v3406_v60  ;;  %v3429_v60 = vld [vmem:[%s4255_s8 + $0x50] sm:$0xff]  }
  0x52   : > { %3005 = vmatprep.subr.bf16.mxu1 %v3408_v61  ;;  %v3431_v61 = vld [vmem:[%s4255_s8 + $0x58] sm:$0xff]  }
  0x55   : > { %3006 = vmatpush3.bf16.msra.mxu1 %v3409_v62  ;;  %v3433_v62 = vld [vmem:[%s4255_s8 + $0x60] sm:$0xff]  }
  0x56   : > { %3007 = vmatprep.subr.bf16.mxu1 %v3411_v63  ;;  %v3435_v63 = vld [vmem:[%s4255_s8 + $0x68] sm:$0xff]  }
  0x59   : > { %3008 = vmatpush3.bf16.msra.mxu1 %v3412_v0  ;;  %v3437_v0 = vld [vmem:[%s4255_s8 + $0x70] sm:$0xff]  }
  0x5a   : > { %3009 = vmatprep.subr.bf16.mxu1 %v3414_v2  ;;  %v3440_v2 = vld [vmem:[%s4255_s8 + $0xc0] sm:$0xff]  }
  0x5d   : > { %3010 = vmatpush3.bf16.msra.mxu1 %v3415_v3  ;;  %v3439_v3 = vld [vmem:[%s4255_s8 + $0x78] sm:$0xff]  }
  0x5e   : > { %3011 = vmatprep.subr.bf16.mxu1 %v3417_v4  ;;  %v3442_v4 = vld [vmem:[%s4255_s8 + $0xc8] sm:$0xff]  }
  0x61   : > { %3012 = vmatpush3.bf16.msra.mxu1 %v3418_v5  ;;  %v3441_v5 = vld [vmem:[%s4255_s8 + $0x140] sm:$0xff]  }
  0x62   : > { %3013 = vmatprep.subr.bf16.mxu1 %v3420_v6  ;;  %v3444_v6 = vld [vmem:[%s4255_s8 + $0xd0] sm:$0xff]  }
  0x65   : > { %3014 = vmatpush3.bf16.msra.mxu1 %v3421_v7  ;;  %v3443_v7 = vld [vmem:[%s4255_s8 + $0x148] sm:$0xff]  }
  0x66   : > { %3162 = vmatprep.subr.bf16.mxu1 %v3506_v1 }
  0x68   : > { %1428 = vmatmul.mubr.bf16.vlgmr.msra.gmra.mrb[8].mxu1 %v3692_v28 }
  0x69   : > { %3163 = vmatpush3.bf16.msra.mxu1 %v3423_v8  ;;  %3178 = vmatprep.mubr.msk.bf16.mxu1 %vm3507_vm0, %v3506_v1  ;;  %v3446_v8 = vld [vmem:[%s4255_s8 + $0xd8] sm:$0xff]  }
  0x6a   : > { %3164 = vmatprep.subr.bf16.mxu1 %v3506_v1 }
  0x6d   : > { %3165 = vmatpush3.bf16.msra.mxu1 %v3426_v9  ;;  %v3445_v9 = vld [vmem:[%s4255_s8 + $0x150] sm:$0xff]  }
  0x6e   : > { %3166 = vmatprep.subr.bf16.mxu1 %v3506_v1 }
  0x71   : > { %3167 = vmatpush3.bf16.msra.mxu1 %v3428_v10  ;;  %v3448_v10 = vld [vmem:[%s4255_s8 + $0xe0] sm:$0xff]  }
  0x72   : > { %3168 = vmatprep.subr.bf16.mxu1 %v3506_v1 }
  0x75   : > { %3169 = vmatpush3.bf16.msra.mxu1 %v3430_v11  ;;  %v3447_v11 = vld [vmem:[%s4255_s8 + $0x158] sm:$0xff]  }
  0x76   : > { %3170 = vmatprep.subr.bf16.mxu1 %v3506_v1 }
  0x79   : > { %3171 = vmatpush3.bf16.msra.mxu1 %v3432_v12  ;;  %v3450_v12 = vld [vmem:[%s4255_s8 + $0xe8] sm:$0xff]  }
  0x7a   : > { %3172 = vmatprep.subr.bf16.mxu1 %v3506_v1 }
  0x7d   : > { %3173 = vmatpush3.bf16.msra.mxu1 %v3434_v13  ;;  %v3449_v13 = vld [vmem:[%s4255_s8 + $0x160] sm:$0xff]  }
  0x7e   : > { %3174 = vmatprep.subr.bf16.mxu1 %v3506_v1 }
  0x81   : > { %3175 = vmatpush3.bf16.msra.mxu1 %v3436_v14  ;;  %v3452_v14 = vld [vmem:[%s4255_s8 + $0xf0] sm:$0xff]  }
  0x82   : > { %3176 = vmatprep.subr.bf16.mxu1 %v3506_v1 }
  0x85   : > { %3177 = vmatpush3.bf16.msra.mxu1 %v3438_v15  ;;  %v3451_v15 = vld [vmem:[%s4255_s8 + $0x168] sm:$0xff]  }
  0x86   : > { %3202 = vmatprep.subr.bf16.mxu1 %v3506_v1 }
  0x88   : > { %3179 = vmatmul.mubr.bf16.vlgmr.msra.gmra.mrb[12].mxu1 %v3870_v16 }
  0x89   : > { %3218 = vmatprep.mubr.msk.bf16.mxu1 %vm3507_vm0, %v3506_v1  ;;  %3203 = vmatpush3.bf16.msra.mxu1 %v3440_v2 }
  0x8a   : > { %3204 = vmatprep.subr.bf16.mxu1 %v3506_v1 }
  0x8d   : > { %3205 = vmatpush3.bf16.msra.mxu1 %v3442_v4  ;;  %v3456_v4 = vld [vmem:[%s4255_s8 + $0x100] sm:$0xff]  }
  0x8e   : > { %3206 = vmatprep.subr.bf16.mxu1 %v3506_v1 }
  0x91   : > { %3207 = vmatpush3.bf16.msra.mxu1 %v3444_v6 }
  0x92   : > { %3208 = vmatprep.subr.bf16.mxu1 %v3506_v1 }
  0x95   : > { %3209 = vmatpush3.bf16.msra.mxu1 %v3446_v8 }
  0x96   : > { %3210 = vmatprep.subr.bf16.mxu1 %v3506_v1 }
  0x99   : > { %3211 = vmatpush3.bf16.msra.mxu1 %v3448_v10 }
  0x9a   : > { %3212 = vmatprep.subr.bf16.mxu1 %v3506_v1 }
  0x9d   : > { %3213 = vmatpush3.bf16.msra.mxu1 %v3450_v12 }
  0x9e   : > { %3214 = vmatprep.subr.bf16.mxu1 %v3506_v1 }
  0xa1   : > { %3215 = vmatpush3.bf16.msra.mxu1 %v3452_v14 }
  0xa2   : > { %3216 = vmatprep.subr.bf16.mxu1 %v3506_v1 }
  0xf9   : > { %v2931_v17 = vpop.f32.mrb[0].mxu0 }
  0xfa   : > { %v764_v18 = vpop.f32.mrb[0].mxu1  ;;  %v2932_v19 = vpop.f32.mrb[1].mxu0 }
  0xfb   : > { %v2933_v20 = vadd.f32 %v2932_v19, %v2931_v17  ;;  %v3120_v21 = vpop.f32.mrb[1].mxu1  ;;  %v2934_v22 = vpop.f32.mrb[2].mxu0  ;;  %v3453_v17 = vld [vmem:[%s4255_s8 + $0x170] sm:$0xff]  }
  0xfc   : > { %v767_v25 = vpop.f32.mrb[2].mxu1  ;;  %v2935_v26 = vpop.f32.mrb[3].mxu0 }
  0xfd   : > { %v765_v27 = vadd.f32 %v2933_v20, %v764_v18  ;;  %v2936_v29 = vadd.f32 %v2935_v26, %v2934_v22  ;;  %v3121_v30 = vpop.f32.mrb[3].mxu1  ;;  %v3455_v18 = vld [vmem:[%s4255_s8 + $0x178] sm:$0xff]  }
  0xff   : > { %v778_v31 = vadd.f32 %v2600_v24, %v765_v27  ;;  %v768_v32 = vadd.f32 %v2936_v29, %v767_v25 }
 0x101   : > { %v779_v33 = vadd.f32 %v2600_v24, %v768_v32  ;;  %v780_v34 = vmax.f32 %v778_v31, 0.0 }
 0x103   : > { %v781_v35 = vmax.f32 %v779_v33, 0.0 }
 0x105   : > { %v782_v37 = vpack.c.bf16 %v781_v35, %v780_v34 }
 0x107   : > { %3139 = vmatmul.mubr.bf16.vlgmr.msra.gmra.mrb[4].mxu0 %v782_v37 }
 0x108   : > { %2978 = vmatpush3.bf16.msra.mxu0 %v3370_v36  ;;  %1272 = vmatprep.mubr.bf16.mxu0 %v3673_v23  ;;  %v3382_v23 = vld [vmem:[%s4256_s9 + $0x118] sm:$0xff]  }
 0x109   : > { %2979 = vmatprep.subr.bf16.mxu0 %v3373_v38 }
 0x10c   : > { %2980 = vmatpush3.bf16.msra.mxu0 %v3374_v39 }
 0x10d   : > { %2981 = vmatprep.subr.bf16.mxu0 %v3377_v40 }
 0x110   : > { %2982 = vmatpush3.bf16.msra.mxu0 %v3378_v41 }
 0x111   : > { %2983 = vmatprep.subr.bf16.mxu0 %v3381_v42 }
 0x114   : > { %2984 = vmatpush3.bf16.msra.mxu0 %v3382_v23 }
 0x115   : > { %2985 = vmatprep.subr.bf16.mxu0 %v3385_v43 }
 0x118   : > { %2986 = vmatpush3.bf16.msra.mxu0 %v3386_v44 }
 0x119   : > { %2987 = vmatprep.subr.bf16.mxu0 %v3389_v45  ;;  %v2601_v45 = vld [vmem:[%s4254_s7] ss:$0 sm:$0xff] }
 0x11b   : > { %v2971_v19 = vpop.f32.mrb[4].mxu1 }
 0x11c   : > { %2988 = vmatpush3.bf16.msra.mxu0 %v3390_v46  ;;  %v2972_v20 = vpop.f32.mrb[5].mxu1 }
 0x11d   : > { %2989 = vmatprep.subr.bf16.mxu0 %v3393_v47  ;;  %v2973_v21 = vadd.f32 %v2972_v20, %v2971_v19  ;;  %v2974_v22 = vpop.f32.mrb[6].mxu1  ;;  %v3460_v19 = vld [vmem:[%s4255_s8 + $0x120] sm:$0xff]   ;;  %v3461_v20 = vld [vmem:[%s4255_s8 + $0x128] sm:$0xff]  }
 0x11e   : > { %v2975_v24 = vpop.f32.mrb[7].mxu1 }
 0x11f   : > { %v1284_v25 = vrot.slane %v2973_v21, 7  ;;  %v2976_v26 = vadd.f32 %v2975_v24, %v2974_v22  ;;  %v3462_v21 = vld [vmem:[%s4255_s8 + $0x130] sm:$0xff]   ;;  %v3463_v22 = vld [vmem:[%s4255_s8 + $0x138] sm:$0xff]  }
 0x120   : > { %2990 = vmatpush3.bf16.msra.mxu0 %v3394_v48 }
 0x121   : > { %2991 = vmatprep.subr.bf16.mxu0 %v3397_v49  ;;  %v1289_v30 = vsel %vm1283_vm1, 0.0, %v1284_v25  ;;  %v1285_v31 = vrot.slane %v2976_v26, 7 }
 0x123   : > { %v1286_v36 = vsel %vm1283_vm1, %v1284_v25, %v1285_v31 }
 0x124   : > { %2992 = vmatpush3.bf16.msra.mxu0 %v3398_v50 }
 0x125   : > { %3142 = vmatprep.subr.bf16.mxu0 %v3506_v1 }
 0x127   : > { %1273 = vmatmul.mubr.bf16.vlgmr.msra.gmra.mrb[8].mxu0 %v3692_v28  ;;  %v3410_v28 = vld [vmem:[%s4255_s8 + $0x18] sm:$0xff]  }
 0x128   : > { %3143 = vmatpush3.bf16.msra.mxu0 %v3401_v51  ;;  %3158 = vmatprep.mubr.msk.bf16.mxu0 %vm3507_vm0, %v3506_v1 }
 0x129   : > { %3144 = vmatprep.subr.bf16.mxu0 %v3506_v1 }
 0x12c   : > { %3145 = vmatpush3.bf16.msra.mxu0 %v3404_v52 }
 0x12d   : > { %3146 = vmatprep.subr.bf16.mxu0 %v3506_v1 }
 0x130   : > { %3147 = vmatpush3.bf16.msra.mxu0 %v3407_v53 }
 0x131   : > { %3148 = vmatprep.subr.bf16.mxu0 %v3506_v1 }
 0x134   : > { %3149 = vmatpush3.bf16.msra.mxu0 %v3410_v28 }
 0x135   : > { %3150 = vmatprep.subr.bf16.mxu0 %v3506_v1 }
 0x138   : > { %3151 = vmatpush3.bf16.msra.mxu0 %v3413_v54 }
 0x139   : > { %3152 = vmatprep.subr.bf16.mxu0 %v3506_v1 }
 0x13b   : > { %v3015_v27 = vpop.f32.mrb[8].mxu1 }
 0x13c   : > { %3153 = vmatpush3.bf16.msra.mxu0 %v3416_v55  ;;  %v3016_v29 = vpop.f32.mrb[9].mxu1 }
 0x13d   : > { %3154 = vmatprep.subr.bf16.mxu0 %v3506_v1  ;;  %v3017_v32 = vadd.f32 %v3016_v29, %v3015_v27  ;;  %v3018_v33 = vpop.f32.mrb[10].mxu1 }
 0x13e   : > { %v3019_v34 = vpop.f32.mrb[11].mxu1 }
 0x13f   : > { %v1430_v35 = vadd.f32 %v3017_v32, %v1289_v30  ;;  %v3020_v37 = vadd.f32 %v3019_v34, %v3018_v33 }
 0x140   : > { %3155 = vmatpush3.bf16.msra.mxu0 %v3419_v56 }
 0x141   : > { %3156 = vmatprep.subr.bf16.mxu0 %v3506_v1  ;;  %v1433_v38 = vadd.f32 %v3020_v37, %v1286_v36 }
 0x144   : > { %3157 = vmatpush3.bf16.msra.mxu0 %v3422_v57 }
 0x145   : > { %3182 = vmatprep.subr.bf16.mxu0 %v3506_v1 }
 0x147   : > { %3159 = vmatmul.mubr.bf16.vlgmr.msra.gmra.mrb[12].mxu0 %v3870_v16 }
 0x148   : > { %3183 = vmatpush3.bf16.msra.mxu0 %v3425_v58  ;;  %3198 = vmatprep.mubr.msk.bf16.mxu0 %vm3507_vm0, %v3506_v1 }
 0x149   : > { %3184 = vmatprep.subr.bf16.mxu0 %v3506_v1 }
 0x14c   : > { %3185 = vmatpush3.bf16.msra.mxu0 %v3427_v59 }
 0x14d   : > { %3186 = vmatprep.subr.bf16.mxu0 %v3506_v1 }
 0x150   : > { %3187 = vmatpush3.bf16.msra.mxu0 %v3429_v60 }
 0x151   : > { %3188 = vmatprep.subr.bf16.mxu0 %v3506_v1 }
 0x154   : > { %3189 = vmatpush3.bf16.msra.mxu0 %v3431_v61 }
 0x155   : > { %3190 = vmatprep.subr.bf16.mxu0 %v3506_v1 }
 0x158   : > { %3191 = vmatpush3.bf16.msra.mxu0 %v3433_v62  ;;  %v3496_v62 = vld [vmem:[%s3679_s16] sm:$0xff] }
 0x159   : > { %3192 = vmatprep.subr.bf16.mxu0 %v3506_v1 }
 0x15b   : > { %v1667_v39 = vpop.f32.mrb[12].mxu1 }
 0x15c   : > { %3193 = vmatpush3.bf16.msra.mxu0 %v3435_v63  ;;  %v1684_v40 = vrot.slane %v1667_v39, 1  ;;  %v3180_v41 = vpop.f32.mrb[13].mxu1 }
 0x15d   : > { %3194 = vmatprep.subr.bf16.mxu0 %v3506_v1  ;;  %v4065_v42 = vpop.f32.mrb[14].mxu1 }
 0x15e   : > { %v1685_v23 = vrot.slane %v4065_v42, 1  ;;  %v3181_v43 = vpop.f32.mrb[15].mxu1  ;;  %v3465_v42 = vld [vmem:[%s4258_s11 + $0x80] sm:$0xff]  }
 0x160   : > { %3195 = vmatpush3.bf16.msra.mxu0 %v3437_v0  ;;  %v4071_v44 = vsel %vm1292_vm2, %v1684_v40, %v1685_v23  ;;  %v3497_v0 = vld [vmem:[%s3679_s16 + $0x8] sm:$0xff]  ;;  %v1689_v36 = vsel %vm1292_vm2, %v1685_v23, 0.0 }
 0x161   : > { %3196 = vmatprep.subr.bf16.mxu0 %v3506_v1  ;;  %v3466_v23 = vld [vmem:[%s4258_s11 + $0x8] sm:$0xff]  }
 0x164   : > { %3197 = vmatpush3.bf16.msra.mxu0 %v3439_v3 }
 0x165   : > { %3222 = vmatprep.subr.bf16.mxu0 %v3506_v1 }
 0x167   : > { %3199 = vmatmul.mubr.bf16.vlgmr.msra.gmra.mrb[16].mxu0 %v3870_v16  ;;  %v3454_v16 = vld [vmem:[%s4255_s8 + $0xf8] sm:$0xff]  }
 0x168   : > { %3223 = vmatpush3.bf16.msra.mxu0 %v3441_v5  ;;  %3238 = vmatprep.mubr.msk.bf16.mxu0 %vm3507_vm0, %v3506_v1 }
 0x169   : > { %3224 = vmatprep.subr.bf16.mxu0 %v3506_v1  ;;  %3217 = vmatpush3.bf16.msra.mxu1 %v3454_v16 }
 0x16a   : > { %3242 = vmatprep.subr.bf16.mxu1 %v3506_v1 }
 0x16c   : > { %3225 = vmatpush3.bf16.msra.mxu0 %v3443_v7 }
 0x16d   : > { %3226 = vmatprep.subr.bf16.mxu0 %v3506_v1 }
 0x170   : > { %3227 = vmatpush3.bf16.msra.mxu0 %v3445_v9 }
 0x171   : > { %3228 = vmatprep.subr.bf16.mxu0 %v3506_v1 }
 0x174   : > { %3229 = vmatpush3.bf16.msra.mxu0 %v3447_v11  ;;  %v3457_v11 = vld [vmem:[%s4255_s8 + $0x108] sm:$0xff]  }
 0x175   : > { %3230 = vmatprep.subr.bf16.mxu0 %v3506_v1 }
 0x178   : > { %3231 = vmatpush3.bf16.msra.mxu0 %v3449_v13 }
 0x179   : > { %3232 = vmatprep.subr.bf16.mxu0 %v3506_v1 }
 0x17c   : > { %3233 = vmatpush3.bf16.msra.mxu0 %v3451_v15 }
 0x17d   : > { %3234 = vmatprep.subr.bf16.mxu0 %v3506_v1 }
 0x180   : > { %3235 = vmatpush3.bf16.msra.mxu0 %v3453_v17  ;;  %v3458_v17 = vld [vmem:[%s4255_s8 + $0x110] sm:$0xff]  }
 0x181   : > { %3236 = vmatprep.subr.bf16.mxu0 %v3506_v1 }
 0x184   : > { %3237 = vmatpush3.bf16.msra.mxu0 %v3455_v18  ;;  %v3459_v18 = vld [vmem:[%s4255_s8 + $0x118] sm:$0xff]  }
 0x185   : > { %3262 = vmatprep.subr.bf16.mxu0 %v3506_v1 }
 0x1da   : > { %v888_v46 = vpop.f32.mrb[4].mxu0 }
 0x1db   : > { %v889_v47 = vadd.f32 %v2601_v45, %v888_v46  ;;  %v3140_v48 = vpop.f32.mrb[5].mxu0  ;;  %v3464_v46 = vld [vmem:[%s4258_s11] sm:$0xff]  }
 0x1dc   : > { %v891_v49 = vpop.f32.mrb[6].mxu0  ;;  %v3469_v48 = vld [vmem:[%s4258_s11 + $0x90] sm:$0xff]  }
 0x1dd   : > { %v895_v50 = vsub.f32 0.0, %v889_v47  ;;  %v892_v51 = vadd.f32 %v2601_v45, %v891_v49  ;;  %v3141_v52 = vpop.f32.mrb[7].mxu0  ;;  %v3468_v47 = vld [vmem:[%s4258_s11 + $0x10] sm:$0xff]   ;;  %v3470_v49 = vld [vmem:[%s4258_s11 + $0x18] sm:$0xff]  }
 0x1de   : > { %v3473_v52 = vld [vmem:[%s4258_s11 + $0xa0] sm:$0xff]  }
 0x1df   : > { %v897_v53 = vmul.f32 1.442695, %v895_v50  ;;  %v896_v28 = vsub.f32 0.0, %v892_v51  ;;  %v3471_v50 = vld [vmem:[%s4258_s11 + $0x98] sm:$0xff]   ;;  %v3472_v51 = vld [vmem:[%s4258_s11 + $0x20] sm:$0xff]  }
 0x1e1   : > { %3488 = vpow2.f32 %v897_v53  ;;  %v899_v54 = vmul.f32 1.442695, %v896_v28  ;;  %v3474_v53 = vld [vmem:[%s4258_s11 + $0x28] sm:$0xff]  }
 0x1e2   : > { %v3475_v28 = vld [vmem:[%s4258_s11 + $0xa8] sm:$0xff]  }
 0x1e3   : > { %3490 = vpow2.f32 %v899_v54  ;;  %v3476_v54 = vld [vmem:[%s4258_s11 + $0x30] sm:$0xff]  }
 0x1eb   : > { %v3489_v55 = vpop.eup %3488 }
 0x1ec   : > { %v901_v56 = vadd.f32 1.0, %v3489_v55  ;;  %v3477_v55 = vld [vmem:[%s4258_s11 + $0xb0] sm:$0xff]  }
 0x1ed   : > { %v3491_v57 = vpop.eup %3490 }
 0x1ee   : > { %3492 = vrcp.f32 %v901_v56  ;;  %v902_v58 = vadd.f32 1.0, %v3491_v57  ;;  %v3478_v56 = vld [vmem:[%s4258_s11 + $0x38] sm:$0xff]  }
 0x1ef   : > { %v3479_v57 = vld [vmem:[%s4258_s11 + $0xb8] sm:$0xff]  }
 0x1f0   : > { %3494 = vrcp.f32 %v902_v58 }
 0x1f8   : > { %v3493_v59 = vpop.eup %3492 }
 0x1f9   : > { %v907_v63 = vmul.f32 %v3496_v62, %v3493_v59 }
 0x1fa   : > { %v3495_v60 = vpop.eup %3494  ;;  %v2993_v61 = vpop.f32.mrb[8].mxu0 }
 0x1fb   : > { %v908_v2 = vmul.f32 %v3497_v0, %v3495_v60  ;;  %v2994_v3 = vpop.f32.mrb[9].mxu0 }
 0x1fc   : > { %v2995_v5 = vadd.f32 %v2994_v3, %v2993_v61  ;;  %v2996_v6 = vpop.f32.mrb[10].mxu0 }
 0x1fd   : > { %v1783_v7 = vpack.c.bf16 %v908_v2, %v907_v63  ;;  %v2997_v8 = vpop.f32.mrb[11].mxu0 }
 0x1fe   : > { %v1293_v9 = vrot.slane %v2995_v5, 1  ;;  %v2998_v10 = vadd.f32 %v2997_v8, %v2996_v6 }
 0x1ff   : > { %3219 = vmatmul.mubr.bf16.vlgmr.msra.gmra.mrb[16].mxu1 %v1783_v7  ;;  %3239 = vmatmul.mubr.bf16.vlgmr.msra.gmra.mrb[20].mxu0 %v1783_v7 }
 0x200   : > { %3243 = vmatpush3.bf16.msra.mxu1 %v3456_v4  ;;  %3258 = vmatprep.mubr.msk.bf16.mxu1 %vm3507_vm0, %v3506_v1  ;;  %v1294_v12 = vrot.slane %v2998_v10, 1 }
 0x201   : > { %3244 = vmatprep.subr.bf16.mxu1 %v3506_v1  ;;  %3278 = vmatprep.mubr.msk.bf16.mxu0 %vm3507_vm0, %v3506_v1 }
 0x202   : > { %v1298_v13 = vsel %vm1292_vm2, %v1294_v12, 0.0  ;;  %v1295_v14 = vsel %vm1292_vm2, %v1293_v9, %v1294_v12  ;;  %3263 = vmatpush3.bf16.msra.mxu0 %v3464_v46 }
 0x203   : > { %v1436_v15 = vadd.f32 %v1430_v35, %v1295_v14  ;;  %v1437_v16 = vadd.f32 %v1433_v38, %v1298_v13  ;;  %3264 = vmatprep.subr.bf16.mxu0 %v3506_v1 }
 0x204   : > { %3245 = vmatpush3.bf16.msra.mxu1 %v3457_v11 }
 0x205   : > { %3246 = vmatprep.subr.bf16.mxu1 %v3506_v1 }
 0x206   : > { %3265 = vmatpush3.bf16.msra.mxu0 %v3466_v23 }
 0x207   : > { %3266 = vmatprep.subr.bf16.mxu0 %v3506_v1 }
 0x208   : > { %3247 = vmatpush3.bf16.msra.mxu1 %v3458_v17 }
 0x209   : > { %3248 = vmatprep.subr.bf16.mxu1 %v3506_v1 }
 0x20a   : > { %3267 = vmatpush3.bf16.msra.mxu0 %v3468_v47 }
 0x20b   : > { %3268 = vmatprep.subr.bf16.mxu0 %v3506_v1 }
 0x20c   : > { %3249 = vmatpush3.bf16.msra.mxu1 %v3459_v18  ;;  %v2851_v18 = vld [vmem:[%s4257_s10] ss:$0 sm:$0xff] }
 0x20d   : > { %3250 = vmatprep.subr.bf16.mxu1 %v3506_v1 }
 0x20e   : > { %3269 = vmatpush3.bf16.msra.mxu0 %v3470_v49 }
 0x20f   : > { %3270 = vmatprep.subr.bf16.mxu0 %v3506_v1 }
 0x210   : > { %3251 = vmatpush3.bf16.msra.mxu1 %v3460_v19 }
 0x211   : > { %3252 = vmatprep.subr.bf16.mxu1 %v3506_v1 }
 0x212   : > { %3271 = vmatpush3.bf16.msra.mxu0 %v3472_v51 }
 0x213   : > { %3272 = vmatprep.subr.bf16.mxu0 %v3506_v1 }
 0x214   : > { %3253 = vmatpush3.bf16.msra.mxu1 %v3461_v20 }
 0x215   : > { %3254 = vmatprep.subr.bf16.mxu1 %v3506_v1 }
 0x216   : > { %3273 = vmatpush3.bf16.msra.mxu0 %v3474_v53  ;;  %v2908_v53 = vld [vmem:[%s4259_s12] ss:$0 sm:$0xff] }
 0x217   : > { %3274 = vmatprep.subr.bf16.mxu0 %v3506_v1 }
 0x218   : > { %3255 = vmatpush3.bf16.msra.mxu1 %v3462_v21 }
 0x219   : > { %3256 = vmatprep.subr.bf16.mxu1 %v3506_v1 }
 0x21a   : > { %v1544_v24 = vpop.f32.mrb[12].mxu0  ;;  %3275 = vmatpush3.bf16.msra.mxu0 %v3476_v54 }
 0x21b   : > { %v1676_v25 = vrot.slane %v1544_v24, 7  ;;  %v3160_v26 = vpop.f32.mrb[13].mxu0  ;;  %3276 = vmatprep.subr.bf16.mxu0 %v3506_v1 }
 0x21c   : > { %3257 = vmatpush3.bf16.msra.mxu1 %v3463_v22  ;;  %v1547_v27 = vpop.f32.mrb[14].mxu0 }
 0x21d   : > { %v1677_v29 = vrot.slane %v1547_v27, 7  ;;  %v3161_v30 = vpop.f32.mrb[15].mxu0  ;;  %3282 = vmatprep.subr.bf16.mxu1 %v3506_v1  ;;  %v1681_v32 = vsel %vm1283_vm1, 0.0, %v1676_v25  ;;  %v3480_v27 = vld [vmem:[%s4258_s11 + $0x40] sm:$0xff]  }
 0x21e   : > { %3277 = vmatpush3.bf16.msra.mxu0 %v3478_v56  ;;  %v3481_v30 = vld [vmem:[%s4258_s11 + $0x48] sm:$0xff]  }
 0x21f   : > { %3259 = vmatmul.mubr.bf16.vlgmr.msra.gmra.mrb[20].mxu1 %v1783_v7  ;;  %v1678_v31 = vsel %vm1283_vm1, %v1676_v25, %v1677_v29  ;;  %3302 = vmatprep.subr.bf16.mxu0 %v3506_v1 }
 0x220   : > { %3298 = vmatprep.mubr.msk.bf16.mxu1 %vm3507_vm0, %v3506_v1  ;;  %3283 = vmatpush3.bf16.msra.mxu1 %v3465_v42 }
 0x221   : > { %3284 = vmatprep.subr.bf16.mxu1 %v3506_v1 }
 0x23a   : > { %v1772_v33 = vpop.f32.mrb[16].mxu0 }
 0x23b   : > { %v1773_v34 = vadd.f32 %v1772_v33, %v1681_v32  ;;  %v3200_v35 = vpop.f32.mrb[17].mxu0  ;;  %v3483_v32 = vld [vmem:[%s4258_s11 + $0x58] sm:$0xff]   ;;  %v3484_v33 = vld [vmem:[%s4258_s11 + $0x60] sm:$0xff]  }
 0x23c   : > { %v1775_v37 = vpop.f32.mrb[18].mxu0  ;;  %v3486_v35 = vld [vmem:[%s4258_s11 + $0x70] sm:$0xff]  }
 0x23d   : > { %v1779_v38 = vadd.f32 %v1773_v34, %v4071_v44  ;;  %v1776_v39 = vadd.f32 %v1775_v37, %v1678_v31  ;;  %v3201_v40 = vpop.f32.mrb[19].mxu0  ;;  %v3467_v44 = vld [vmem:[%s4258_s11 + $0x88] sm:$0xff]   ;;  %v3482_v31 = vld [vmem:[%s4258_s11 + $0x50] sm:$0xff]  }
 0x23e   : > { %3285 = vmatpush3.bf16.msra.mxu1 %v3467_v44  ;;  %v3485_v34 = vld [vmem:[%s4258_s11 + $0x68] sm:$0xff]  }
 0x23f   : > { %v1780_v41 = vadd.f32 %v1776_v39, %v1689_v36  ;;  %v4124_v43 = vadd.f32 %v1779_v38, %v1436_v15  ;;  %3286 = vmatprep.subr.bf16.mxu1 %v3506_v1  ;;  %v3487_v36 = vld [vmem:[%s4258_s11 + $0x78] sm:$0xff]  }
 0x241   : > { %v4126_v45 = vadd.f32 %v1780_v41, %v1437_v16 }
 0x242   : > { %3287 = vmatpush3.bf16.msra.mxu1 %v3469_v48 }
 0x243   : > { %3288 = vmatprep.subr.bf16.mxu1 %v3506_v1 }
 0x246   : > { %3289 = vmatpush3.bf16.msra.mxu1 %v3471_v50 }
 0x247   : > { %3290 = vmatprep.subr.bf16.mxu1 %v3506_v1 }
 0x24a   : > { %3291 = vmatpush3.bf16.msra.mxu1 %v3473_v52 }
 0x24b   : > { %3292 = vmatprep.subr.bf16.mxu1 %v3506_v1 }
 0x24e   : > { %3293 = vmatpush3.bf16.msra.mxu1 %v3475_v28 }
 0x24f   : > { %3294 = vmatprep.subr.bf16.mxu1 %v3506_v1 }
 0x252   : > { %3295 = vmatpush3.bf16.msra.mxu1 %v3477_v55 }
 0x253   : > { %3296 = vmatprep.subr.bf16.mxu1 %v3506_v1 }
 0x256   : > { %3297 = vmatpush3.bf16.msra.mxu1 %v3479_v57 }
 0x2d2   : > { %v1883_v58 = vpop.f32.mrb[16].mxu1  ;;  %v2006_v59 = vpop.f32.mrb[20].mxu0 }
 0x2d3   : > { %v3220_v60 = vpop.f32.mrb[17].mxu1  ;;  %v3240_v61 = vpop.f32.mrb[21].mxu0  ;;  %v2015_v0 = vrot.slane %v1883_v58, 7  ;;  %v2023_v2 = vrot.slane %v2006_v59, 1 }
 0x2d4   : > { %v1886_v62 = vpop.f32.mrb[18].mxu1  ;;  %v2009_v63 = vpop.f32.mrb[22].mxu0 }
 0x2d5   : > { %v2016_v3 = vrot.slane %v1886_v62, 7  ;;  %v2024_v4 = vrot.slane %v2009_v63, 1  ;;  %v3221_v5 = vpop.f32.mrb[19].mxu1  ;;  %v3241_v6 = vpop.f32.mrb[23].mxu0  ;;  %v2020_v9 = vsel %vm1283_vm1, 0.0, %v2015_v0 }
 0x2d7   : > { %v2025_v7 = vsel %vm1292_vm2, %v2023_v2, %v2024_v4  ;;  %v2017_v8 = vsel %vm1283_vm1, %v2015_v0, %v2016_v3  ;;  %v2028_v17 = vsel %vm1292_vm2, %v2024_v4, 0.0 }
 0x2f2   : > { %v2111_v10 = vpop.f32.mrb[20].mxu1 }
 0x2f3   : > { %v2112_v11 = vadd.f32 %v2111_v10, %v2020_v9  ;;  %v3260_v12 = vpop.f32.mrb[21].mxu1 }
 0x2f4   : > { %v2114_v13 = vpop.f32.mrb[22].mxu1 }
 0x2f5   : > { %v2118_v14 = vadd.f32 %v2112_v11, %v2025_v7  ;;  %v2115_v15 = vadd.f32 %v2114_v13, %v2017_v8  ;;  %v3261_v16 = vpop.f32.mrb[23].mxu1 }
 0x2f7   : > { %v2120_v19 = vadd.f32 %v2118_v14, %v4124_v43  ;;  %v2119_v20 = vadd.f32 %v2115_v15, %v2028_v17 }
 0x2f9   : > { %v2129_v21 = vadd.f32 %v2851_v18, %v2120_v19  ;;  %v2121_v22 = vadd.f32 %v2119_v20, %v4126_v45 }
 0x2fb   : > { %v2130_v24 = vadd.f32 %v2851_v18, %v2121_v22  ;;  %v2131_v25 = vmax.f32 %v2129_v21, 0.0 }
 0x2fd   : > { %v2132_v26 = vmax.f32 %v2130_v24, 0.0 }
 0x2ff   : > { %v2133_v29 = vpack.c.bf16 %v2132_v26, %v2131_v25 }
 0x301   : > { %3279 = vmatmul.mubr.bf16.vlgmr.msra.gmra.mrb[24].mxu0 %v2133_v29  ;;  %3299 = vmatmul.mubr.bf16.vlgmr.msra.gmra.mrb[24].mxu1 %v2133_v29 }
 0x302   : > { %3303 = vmatpush3.bf16.msra.mxu0 %v3480_v27  ;;  %3318 = vmatprep.mubr.msk.bf16.mxu0 %vm3507_vm0, %v3506_v1 }
 0x303   : > { %3304 = vmatprep.subr.bf16.mxu0 %v3506_v1 }
 0x306   : > { %3305 = vmatpush3.bf16.msra.mxu0 %v3481_v30 }
 0x307   : > { %3306 = vmatprep.subr.bf16.mxu0 %v3506_v1 }
 0x30a   : > { %3307 = vmatpush3.bf16.msra.mxu0 %v3482_v31 }
 0x30b   : > { %3308 = vmatprep.subr.bf16.mxu0 %v3506_v1 }
 0x30e   : > { %3309 = vmatpush3.bf16.msra.mxu0 %v3483_v32 }
 0x30f   : > { %3310 = vmatprep.subr.bf16.mxu0 %v3506_v1 }
 0x312   : > { %3311 = vmatpush3.bf16.msra.mxu0 %v3484_v33 }
 0x313   : > { %3312 = vmatprep.subr.bf16.mxu0 %v3506_v1 }
 0x316   : > { %3313 = vmatpush3.bf16.msra.mxu0 %v3485_v34 }
 0x317   : > { %3314 = vmatprep.subr.bf16.mxu0 %v3506_v1 }
 0x31a   : > { %3315 = vmatpush3.bf16.msra.mxu0 %v3486_v35 }
 0x31b   : > { %3316 = vmatprep.subr.bf16.mxu0 %v3506_v1 }
 0x31e   : > { %3317 = vmatpush3.bf16.msra.mxu0 %v3487_v36 }
 0x321   : > { %3319 = vmatmul.mubr.bf16.vlgmr.msra.gmra.mrb[28].mxu0 %v2133_v29 }
 0x3d4   : > { %v2232_v37 = vpop.f32.mrb[24].mxu0  ;;  %v2355_v38 = vpop.f32.mrb[24].mxu1 }
 0x3d5   : > { %v3280_v39 = vpop.f32.mrb[25].mxu0  ;;  %v3300_v40 = vpop.f32.mrb[25].mxu1  ;;  %v2364_v45 = vrot.slane %v2232_v37, 7  ;;  %v2372_v46 = vrot.slane %v2355_v38, 1 }
 0x3d6   : > { %v2235_v41 = vpop.f32.mrb[26].mxu0  ;;  %v2358_v43 = vpop.f32.mrb[26].mxu1 }
 0x3d7   : > { %v2365_v42 = vrot.slane %v2235_v41, 7  ;;  %v2373_v23 = vrot.slane %v2358_v43, 1  ;;  %v3281_v44 = vpop.f32.mrb[27].mxu0  ;;  %v3301_v47 = vpop.f32.mrb[27].mxu1  ;;  %v2369_v1 = vsel %vm1283_vm1, 0.0, %v2364_v45 }
 0x3d9   : > { %v2374_v48 = vsel %vm1292_vm2, %v2372_v46, %v2373_v23  ;;  %v2366_v49 = vsel %vm1283_vm1, %v2364_v45, %v2365_v42  ;;  %v2377_v57 = vsel %vm1292_vm2, %v2373_v23, 0.0 }
 0x3f4   : > { %v2460_v50 = vpop.f32.mrb[28].mxu0 }
 0x3f5   : > { %v2461_v51 = vadd.f32 %v2460_v50, %v2369_v1  ;;  %v3320_v52 = vpop.f32.mrb[29].mxu0 }
 0x3f6   : > { %v2463_v28 = vpop.f32.mrb[30].mxu0 }
 0x3f7   : > { %v2467_v54 = vadd.f32 %v2461_v51, %v2374_v48  ;;  %v2464_v55 = vadd.f32 %v2463_v28, %v2366_v49  ;;  %v3321_v56 = vpop.f32.mrb[31].mxu0 }
 0x3f9   : > { %v2476_v58 = vadd.f32 %v2908_v53, %v2467_v54  ;;  %v2468_v59 = vadd.f32 %v2464_v55, %v2377_v57 }
 0x3fb   : > { %v2478_v60 = vmax.f32 %v2476_v58, 0.0  ;;  %v2477_v61 = vadd.f32 %v2908_v53, %v2468_v59 }
 0x3fd   : > { %2480 = vst [vmem:[%s480_s28] sm:$0xff] %v2478_v60  ;;  %v2479_v62 = vmax.f32 %v2477_v61, 0.0 }
 0x3ff   : > { %2481 = vst [vmem:[%s480_s28 + $0x8] sm:$0xff] %v2479_v62 }
 0x400 PF: > { %s23_s25 = sadd.s32 1, %s3504_s25  }
 0x401   : > { %p20_p4 = scmp.ge.s32.totalorder %s23_s25, 4  }
 0x403   :  { %22 = sbr.rel (!%p20_p4) target bundleno = 1 (0x1), region = 117 }

</bundles_post_ra>
